<compile_context>
chip_gen: v7x
topology: tpu7x:2x2x1
jax: 0.10.0
libtpu: 0.0.40
codegen_flags: <defaults>
</compile_context>

<pallas_src>
import jax
import jax.numpy as jnp
from jax.experimental import pallas as pl
from jax.experimental.pallas import tpu as pltpu

# Below this many bytes per operand, let XLA's fused add win (fusion with
# producers/consumers for free, no pallas_call launch overhead).
_PALLAS_MIN_BYTES = 8 * 1024 * 1024

_LANE = 128      # vreg lane width (last dim)
_SUBLANE = 8     # vreg sublane count (second-to-last dim)
_TARGET_TILE_BYTES = 4 * 1024 * 1024   # <= ~4 MiB per tile: safe on v7x VMEM


def _add_kernel(a_ref, b_ref, o_ref):
    # Full-tile elementwise add on the VPU; lane-dense blocks give unmasked
    # full-width vector stores.
    o_ref[...] = a_ref[...] + b_ref[...]


def _pallas_add_2d(a: jax.Array, b: jax.Array) -> jax.Array:
    """Tiled elementwise add for large 2-D arrays (HBM-bandwidth bound)."""
    M, N = a.shape
    itemsize = jnp.dtype(a.dtype).itemsize

    # Prefer full-width rows: one contiguous HBM stream per tile.
    if N * itemsize <= _TARGET_TILE_BYTES:
        tn = N
    else:
        # N alone is too large for the tile budget: tile it in lane multiples.
        tn = max(_LANE, (_TARGET_TILE_BYTES // itemsize // _LANE) * _LANE)
        tn = min(tn, N)

    # Rows per tile: fill the tile budget, multiple of 8 sublanes.
    tm = max(_SUBLANE, (_TARGET_TILE_BYTES // (tn * itemsize) // _SUBLANE) * _SUBLANE)
    tm = min(tm, M)

    # v7x has 2 TensorCores: keep >= 2 grid steps along the parallel row axis
    # when the array is big enough, so megacore sharding has work to split.
    if pl.cdiv(M, tm) * pl.cdiv(N, tn) < 2 and M >= 2 * _SUBLANE:
        half_m = ((M + 1) // 2 + _SUBLANE - 1) // _SUBLANE * _SUBLANE
        tm = min(M, max(_SUBLANE, half_m))

    grid = (pl.cdiv(M, tm), pl.cdiv(N, tn))

    return pl.pallas_call(
        _add_kernel,
        out_shape=jax.ShapeDtypeStruct((M, N), a.dtype),
        grid=grid,
        in_specs=[
            pl.BlockSpec((tm, tn), lambda i, j: (i, j)),
            pl.BlockSpec((tm, tn), lambda i, j: (i, j)),
        ],
        out_specs=pl.BlockSpec((tm, tn), lambda i, j: (i, j)),
        compiler_params=pltpu.CompilerParams(
            # Independent output tiles on both axes -> shard across TCs (v7x).
            dimension_semantics=("parallel", "parallel"),
            # Explicit limit: fits v7x (64 MiB physical) and avoids v5e's
            # silent 16 MiB scoped default when tiles are grown.
            vmem_limit_bytes=32 * 1024 * 1024,
        ),
        cost_estimate=pl.CostEstimate(
            flops=M * N,
            bytes_accessed=3 * M * N * itemsize,
            transcendentals=0,
        ),
    )(a, b)


def pallas_add(a: jax.Array, b: jax.Array, *, min_bytes: int = _PALLAS_MIN_BYTES) -> jax.Array:
    """Elementwise add; uses a Pallas TPU kernel only when it pays off."""
    assert a.shape == b.shape and a.dtype == b.dtype
    nbytes = a.size * jnp.dtype(a.dtype).itemsize
    if a.ndim == 0 or nbytes < min_bytes:
        # Tiny tensors (e.g. the module's (2, 2) inputs) or anything where the
        # XLA fused add wins: no fusion barrier, no launch overhead.
        return a + b

    orig_shape = a.shape
    last = orig_shape[-1]

    if a.ndim >= 2 and last >= _LANE and last % _LANE == 0:
        # Trailing dim already lane-dense: just collapse leading dims.
        a2 = a.reshape(-1, last)
        b2 = b.reshape(-1, last)
        return _pallas_add_2d(a2, b2).reshape(orig_shape)

    # 1-D input or trailing dim not lane-dense: re-lay out the flat size into
    # a lane/sublane-dense slab (elementwise add is shape-agnostic).  Any
    # ragged tail goes through the XLA path.
    nd = 8 * _LANE  # 1024 lanes per row
    size = a.size
    main = (size // nd) * nd
    if main == 0:
        return a + b
    a_flat = a.reshape(-1)
    b_flat = b.reshape(-1)
    out_main = _pallas_add_2d(
        a_flat[:main].reshape(-1, nd), b_flat[:main].reshape(-1, nd)
    ).reshape(-1)
    if main < size:
        tail = a_flat[main:] + b_flat[main:]
        out_flat = jnp.concatenate([out_main, tail])
    else:
        out_flat = out_main
    return out_flat.reshape(orig_shape)


def module_containers_forward(d, *, min_bytes: int = _PALLAS_MIN_BYTES):
    """JAX/Pallas equivalent of ModuleContainers.forward."""
    a = d['a']
    b = d['b']
    return {'inputs': (a, b), 'c': pallas_add(a, b, min_bytes=min_bytes)}


if __name__ == "__main__":
    key = jax.random.PRNGKey(0)
    ka, kb, kc, kd, ke, kf = jax.random.split(key, 6)

    # 1) Module-native shapes, matching get_random_inputs(): {'a': (2,2), 'b': (2,2)}.
    #    Takes the fast (non-Pallas) dispatch path per the perf review.
    a = jax.random.normal(ka, (2, 2), dtype=jnp.float32)
    b = jax.random.normal(kb, (2, 2), dtype=jnp.float32)
    out = module_containers_forward({'a': a, 'b': b})
    jax.block_until_ready(out)
    assert jnp.allclose(out['c'], a + b, atol=1e-6), "mismatch in c (small/XLA path)"
    assert jnp.array_equal(out['inputs'][0], a)
    assert jnp.array_equal(out['inputs'][1], b)

    # 2) Exercise the tiled Pallas path on a lane-dense shape (force dispatch
    #    with min_bytes=0 so the test stays small/fast).  (1024, 512) f32 gives
    #    full-row tiles and a >= 2-step grid along the parallel row axis.
    big_a = jax.random.normal(kc, (1024, 512), dtype=jnp.float32)
    big_b = jax.random.normal(kd, (1024, 512), dtype=jnp.float32)
    big_out = module_containers_forward({'a': big_a, 'b': big_b}, min_bytes=0)
    jax.block_until_ready(big_out)
    assert jnp.allclose(big_out['c'], big_a + big_b, atol=1e-6), "mismatch in c (Pallas path)"
    assert jnp.array_equal(big_out['inputs'][0], big_a)
    assert jnp.array_equal(big_out['inputs'][1], big_b)

    # 3) Exercise the lane-densification (1-D + ragged tail) path.
    n = 300000  # not a multiple of 1024 -> main slab via Pallas, tail via XLA
    flat_a = jax.random.normal(ke, (n,), dtype=jnp.float32)
    flat_b = jax.random.normal(kf, (n,), dtype=jnp.float32)
    flat_out = module_containers_forward({'a': flat_a, 'b': flat_b}, min_bytes=0)
    jax.block_until_ready(flat_out)
    assert jnp.allclose(flat_out['c'], flat_a + flat_b, atol=1e-6), "mismatch in c (1-D path)"
    assert jnp.array_equal(flat_out['inputs'][0], flat_a)
    assert jnp.array_equal(flat_out['inputs'][1], flat_b)

    print("KERNEL_OK")
</pallas_src>

<mosaic_0001>
module attributes {stable_mosaic.version = 11 : i64} {
  func.func @_add_kernel(%arg0: i32, %arg1: i32, %arg2: memref<512x512xf32, #tpu.memory_space<vmem>>, %arg3: memref<512x512xf32, #tpu.memory_space<vmem>>, %arg4: memref<512x512xf32, #tpu.memory_space<vmem>>) attributes {dimension_semantics = [#tpu.dimension_semantics<parallel>, #tpu.dimension_semantics<parallel>], iteration_bounds = array<i64: 2, 1>, scalar_prefetch = 0 : i64, scratch_operands = 0 : i64, tpu.core_type = #tpu.core_type<tc>, window_params = [{transform_indices = @transform_0, window_bounds = array<i64: 512, 512>}, {transform_indices = @transform_1, window_bounds = array<i64: 512, 512>}, {transform_indices = @transform_2, window_bounds = array<i64: 512, 512>}]} {
    %c0 = arith.constant 0 : index
    %c0_0 = arith.constant 0 : index
    %0 = vector.load %arg2[%c0, %c0_0] : memref<512x512xf32, #tpu.memory_space<vmem>>, vector<512x512xf32>
    %c0_1 = arith.constant 0 : index
    %c0_2 = arith.constant 0 : index
    %1 = vector.load %arg3[%c0_1, %c0_2] : memref<512x512xf32, #tpu.memory_space<vmem>>, vector<512x512xf32>
    %2 = arith.addf %0, %1 : vector<512x512xf32>
    %c0_3 = arith.constant 0 : index
    %c0_4 = arith.constant 0 : index
    %3 = vector.load %arg4[%c0_3, %c0_4] : memref<512x512xf32, #tpu.memory_space<vmem>>, vector<512x512xf32>
    tpu.vector_store %arg4[%c0_3, %c0_4], %2 {strides = array<i32>} : memref<512x512xf32, #tpu.memory_space<vmem>>, vector<512x512xf32>,
    return
  }
  func.func @transform_0(%arg0: i32, %arg1: i32) -> (i32, i32) {
    %c0_i32 = arith.constant 0 : i32
    return %arg0, %arg1 : i32, i32
  }
  func.func @transform_1(%arg0: i32, %arg1: i32) -> (i32, i32) {
    %c0_i32 = arith.constant 0 : i32
    return %arg0, %arg1 : i32, i32
  }
  func.func @transform_2(%arg0: i32, %arg1: i32) -> (i32, i32) {
    %c0_i32 = arith.constant 0 : i32
    return %arg0, %arg1 : i32, i32
  }
}

</mosaic_0001>

<bundles_post_ra>
// kernel: tpu_custom_call.1
= control target key start
LH: loop header
LB: loop body
LE: loop exit
PB: predicated region body
PF: predicated region fallthrough
CT: control target
= control target key end

     0   :  { %7 = vsyncpa [#allocation3], 0  ;;  %s2666_s0 = inlined_call_operand.hbm [shape: f32[1024,512], index: 0, kind: input, shape index: {}]   ;;  %s2667_s1 = inlined_call_operand.hbm [shape: f32[1024,512], index: 1, kind: input, shape index: {}]   ;;  %s2668_s2 = inlined_call_operand.hbm [shape: f32[1024,512], index: 2, kind: output, shape index: {}]  }
   0x1   :  { %9 = vsyncpa [#allocation3 + $0x1], 0 }
   0x2   :  { %10 = vsyncpa [#allocation6], 0 }
   0x3   :  { %12 = vsyncpa [#allocation6 + $0x1], 0 }
   0x4   :  { %13 = vsyncpa [#allocation4], 0 }
   0x5   :  { %15 = vsyncpa [#allocation4 + $0x1], 0  ;;  %s1655_s9 = smov 0   ;;  %s1657_s10 = smov 0  }
   0x6   :  { %s1659_s11 = smov 0   ;;  %s1661_s12 = smov 0  }
   0x7   :  { %s1663_s13 = smov 0   ;;  %s1665_s14 = smov 0  }
   0x8 LB: > { %s1386_s15 = sadd.s32 4294967295, %s1631_s14   ;;  %s1387_s16 = sadd.s32 4294967294, %s1631_s14   ;;  %s1631_s14 = sphi %s1665_s14, %s21_s14   ;;  %s1627_s13 = sphi %s1663_s13, %s2686_s13   ;;  %s1623_s12 = sphi %s1661_s12, %s2685_s12   ;;  %s1619_s11 = sphi %s1659_s11, %s2684_s11   ;;  %s1615_s10 = sphi %s1657_s10, %s2683_s10   ;;  %s1611_s9 = sphi %s1655_s9, %s2682_s9  }
   0x9   : > { %s33_s17 = sadd.s32 1, %s1627_s13  ;;  %s42_s18 = sadd.s32 1, %s1619_s11 }
   0xa   : > { %p35_p0 = scmp.ge.s32.totalorder %s33_s17, 2  ;;  %p49_p1 = scmp.ne.s32.totalorder %s1619_s11, %s1615_s10 }
   0xb   : > { %p50_p2 = scmp.eq.s32.totalorder %s1631_s14, 0  ;;  %p55_p3 = scmp.ne.s32.totalorder %s1615_s10, %s1611_s9 }
   0xc   : > { %s2688_s17 = smov (%p35_p0, %s33_s17), 0  ;;  %p56_p5 = scmp.eq.s32.totalorder %s1386_s15, 0 }
   0xd   : > { %p1696_p4 = por %p50_p2, %p49_p1  ;;  %s37_s20 = ssub.s32 %s1627_s13, %s2688_s17 }
   0xe   : > { %p109_p6 = scmp.eq.s32.totalorder %s1386_s15, 1  ;;  %p40_p7 = scmp.eq.s32.totalorder %s37_s20, 0 }
   0xf   : > { %p1702_p8 = por %p56_p5, %p55_p3  ;;  %p115_p10 = scmp.eq.s32.totalorder %s1387_s16, 1 }
  0x10   : > { %p1706_p9 = por %p109_p6, %p49_p1  ;;  %p1431_p13 = scmp.lt.s32.totalorder %s1631_s14, 2 }
  0x11   : > { %s2672_s21 = scalar_select %p1702_p8, 1, 0 }
  0x12   : > { %s2673_s22 = scalar_select %p1706_p9, 1, 0 }
  0x13   : > { %s1711_s23 = scalar_select %p40_p7, %s1619_s11, %s42_s18  }
  0x14   : > { %p1713_p11 = por %p115_p10, %p55_p3  ;;  %s1720_s25 = sand.u32 1, %s1619_s11  }
  0x15   : > { %s1390_s26 = sshll.u32 %s1720_s25, 11  ;;  %s1409_s27 = sshll.u32 %s1627_s13, 15 }
  0x16   : > { %s2674_s24 = scalar_select %p1713_p11, 1, 0 }
  0x17   : > { %s1729_s30 = scalar_lea.hbm %s2666_s0, %s1409_s27  ;;  %s139_s3 = scalar_lea.vmem [#allocation2], %s1390_s26 }
  0x18   : > { %s149_s4 = sshll.u32 %s139_s3, 4  ;;  %p1737_p0 = pnand %p1431_p13, %p1696_p4  ;;  %s1733_s4 = int_to_ptr.vmem [resolvable:$true] %s149_s4 }
  0x19   : > { %s136_s6 = scalar_lea.sflag [#allocation3], %s1720_s25  ;;  %s1485_s7 = scalar_lea.hbm %s1729_s30, 32768 }
  0x1a   : > { %p1486_p2 = scmp.ne.s32.totalorder %s1729_s30, %s1485_s7  ;;  %p1487_p3 = pneg %p1737_p0 }
  0x1b   : > { %s1490_s16 = scalar_lea.hbm %s2666_s0, 65536  ;;  %p1491_p4 = scmp.lt.u32.totalorder %s1729_s30, %s2666_s0 }
  0x1c   : > { %p1488_p5 = pnand %p1487_p3, %p1486_p2  ;;  %p1492_p7 = scmp.lt.u32.totalorder %s1490_s16, %s1485_s7 }
  0x1d   : > { %p1494_p13 = scmp.lt.u32.totalorder %s1485_s7, %s1729_s30 }
  0x1e   : > { %p1489_p6 = pneg %p1488_p5  ;;  %p1493_p10 = por %p1492_p7, %p1491_p4 }
  0x20   : > { %p1495_p12 = por %p1494_p13, %p1493_p10 }
  0x22   : > { %p1496_p1 = pnand %p1495_p12, %p1489_p6 }
  0x24   : > { %1499 = shalt.err (!%p1496_p1)
}
  0x25   : > { %s1500_s20 = scalar_lea.vmem %s1733_s4, 32768  ;;  %s1633_s28 = smov [#allocation2]  }
  0x26   : > { %p1501_p2 = scmp.ne.s32.totalorder %s1733_s4, %s1500_s20  ;;  %s1505_s29 = sshll.u32 %s1633_s28, 4  ;;  %s1506_s29 = int_to_ptr.vmem [resolvable:$false] %s1505_s29 }
  0x27   : > { %s1507_s3 = scalar_lea.vmem %s1506_s29, 65536  ;;  %p1508_p9 = scmp.lt.s32.totalorder %s1733_s4, %s1506_s29 }
  0x28   : > { %p1503_p5 = pnand %p1501_p2, %p1487_p3  ;;  %p1509_p4 = scmp.lt.s32.totalorder %s1507_s3, %s1500_s20 }
  0x2a   : > { %p1504_p11 = pneg %p1503_p5  ;;  %p1510_p7 = por %p1509_p4, %p1508_p9 }
  0x2c   : > { %p1511_p10 = pnand %p1510_p7, %p1504_p11 }
  0x2e   : > { %1514 = shalt.err (!%p1511_p10)
}
  0x2f   : > { %s1634_s7 = smov 512   ;;  %s1635_s8 = smov 32  }
  0x30   : > { %1423 = dma.hbm_to_vmem [thread:$0]  (!%p1737_p0), %s1729_s30, 32768, %s1733_s4, %s136_s6, %s1634_s7, %s1634_s7, %s1635_s8  }
  0x31   : > { %p181_p9 = scmp.lt.s32.totalorder %s1631_s14, 3  ;;  %s1779_s18 = scalar_lea.hbm %s2667_s1, %s1409_s27 }
  0x32   : > { %p2676_p11 = scmp.ge.s32.totalorder %s1631_s14, 1  ;;  %s163_s20 = scalar_lea.vmem [#allocation5], %s1390_s26 }
  0x33   : > { %s173_s28 = sshll.u32 %s163_s20, 4  ;;  %s160_s30 = scalar_lea.sflag [#allocation6], %s1720_s25  ;;  %s1789_s28 = int_to_ptr.vmem [resolvable:$true] %s173_s28 }
  0x34   : > { %p1783_p12 = pnand %p2676_p11, %p181_p9  ;;  %s1515_s4 = scalar_lea.hbm %s1779_s18, 32768 }
  0x35   : > { %p1516_p1 = scmp.ne.s32.totalorder %s1779_s18, %s1515_s4  ;;  %s1520_s29 = scalar_lea.hbm %s2667_s1, 65536 }
  0x36   : > { %p1521_p2 = scmp.lt.u32.totalorder %s1779_s18, %s2667_s1  ;;  %p1522_p5 = scmp.lt.u32.totalorder %s1520_s29, %s1515_s4 }
  0x37   : > { %p1518_p6 = pnand %p1516_p1, %p1487_p3  ;;  %p1524_p7 = scmp.lt.u32.totalorder %s1515_s4, %s1779_s18 }
  0x38   : > { %p1523_p4 = por %p1522_p5, %p1521_p2 }
  0x39   : > { %p1519_p13 = pneg %p1518_p6 }
  0x3a   : > { %p1525_p10 = por %p1524_p7, %p1523_p4 }
  0x3c   : > { %p1526_p9 = pnand %p1525_p10, %p1519_p13 }
  0x3e   : > { %1529 = shalt.err (!%p1526_p9)
}
  0x3f   : > { %s1530_s26 = scalar_lea.vmem %s1789_s28, 32768  ;;  %s1636_s16 = smov [#allocation5]  }
  0x40   : > { %p1531_p11 = scmp.ne.s32.totalorder %s1789_s28, %s1530_s26  ;;  %s1535_s20 = sshll.u32 %s1636_s16, 4  ;;  %s1536_s20 = int_to_ptr.vmem [resolvable:$false] %s1535_s20 }
  0x41   : > { %s1537_s27 = scalar_lea.vmem %s1536_s20, 65536  ;;  %p1538_p8 = scmp.lt.s32.totalorder %s1789_s28, %s1536_s20 }
  0x42   : > { %p1533_p1 = pnand %p1531_p11, %p1487_p3  ;;  %p1539_p2 = scmp.lt.s32.totalorder %s1537_s27, %s1530_s26 }
  0x44   : > { %p1534_p6 = pneg %p1533_p1  ;;  %p1540_p5 = por %p1539_p2, %p1538_p8 }
  0x46   : > { %p1541_p4 = pnand %p1540_p5, %p1534_p6 }
  0x48   : > { %1544 = shalt.err (!%p1541_p4)
}
  0x49   : > { %1426 = dma.hbm_to_vmem [thread:$0]  (!%p1737_p0), %s1779_s18, 32768, %s1789_s28, %s160_s30, %s1634_s7, %s1634_s7, %s1635_s8  }
  0x4a   : > { %185 = sbr.rel (%p1783_p12) target bundleno = 301 (0x12d), region = 28  ;;  %s1823_s4 = sand.u32 (!%p1783_p12), 1, %s1615_s10  }
  0x4b   : > { %s1399_s6 = sshll.u32 (!%p1783_p12), %s1823_s4, 11  ;;  %s188_s29 = scalar_lea.sflag (!%p1783_p12), [#allocation3], %s1823_s4 }
  0x4c   : > { %s1827_s5 = scalar_lea.vmem (!%p1783_p12), [#allocation2], %s1399_s6  ;;  %p2678_p8 = scmp.ne.s32.totalorder (!%p1783_p12), %s2672_s21, 0 }
  0x51   : > { %1598 = dma.done.wait (%p2678_p8), %s188_s29, 32768  }
  0x52   : > { %1600 = vsyncadd (%p2678_p8), %s188_s29, 4294934528  ;;  %s197_s25 = scalar_lea.sflag [#allocation6], %s1823_s4  ;;  %s1834_s7 = scalar_lea.vmem [#allocation5], %s1399_s6 }
  0x53   : > { %1602 = dma.done.wait (%p2678_p8), %s197_s25, 32768  }
  0x54   : > { %1604 = vsyncadd (%p2678_p8), %s197_s25, 4294934528  ;;  %v232_v0 = vld [vmem:[%s1827_s5] sm:$0xff]  ;;  %v233_v2 = vld [vmem:[%s1827_s5 + $0x8] sm:$0xff]  ;;  %s1849_s21 = scalar_lea.vmem [#allocation7], %s1399_s6  ;;  %s1413_s8 = sshll.u32 %s1623_s12, 15 }
  0x55   : > { %v488_v1 = vld [vmem:[%s1834_s7] sm:$0xff]  ;;  %v489_v4 = vld [vmem:[%s1834_s7 + $0x8] sm:$0xff]  ;;  %v234_v5 = vld [vmem:[%s1827_s5 + $0x10] sm:$0xff]  ;;  %s1273_s18 = sshll.u32 %s1849_s21, 4  ;;  %s2611_s28 = scalar_lea.hbm %s2668_s2, %s1413_s8  ;;  %s2613_s18 = int_to_ptr.vmem [resolvable:$true] %s1273_s18 }
  0x56   : > { %v744_v3 = vadd.f32 %v488_v1, %v232_v0  ;;  %v490_v6 = vld [vmem:[%s1834_s7 + $0x10] sm:$0xff]  ;;  %v745_v7 = vadd.f32 %v489_v4, %v233_v2  ;;  %v235_v9 = vld [vmem:[%s1827_s5 + $0x18] sm:$0xff]  ;;  %v236_v11 = vld [vmem:[%s1827_s5 + $0x20] sm:$0xff]  ;;  %s1257_s30 = scalar_lea.sflag [#allocation4], %s1823_s4  ;;  %s1545_s3 = scalar_lea.vmem %s2613_s18, 32768 }
  0x57   : > { %v746_v8 = vadd.f32 %v490_v6, %v234_v5  ;;  %v491_v10 = vld [vmem:[%s1834_s7 + $0x18] sm:$0xff]  ;;  %v492_v13 = vld [vmem:[%s1834_s7 + $0x20] sm:$0xff]  ;;  %v237_v14 = vld [vmem:[%s1827_s5 + $0x28] sm:$0xff]  ;;  %p1546_p0 = scmp.ne.s32.totalorder %s2613_s18, %s1545_s3  ;;  %p2679_p3 = scmp.ne.s32.totalorder %s2673_s22, 0 }
  0x58   : > { %1000 = vst [vmem:[%s1849_s21] sm:$0xff] %v744_v3  ;;  %v747_v12 = vadd.f32 %v491_v10, %v235_v9  ;;  %v493_v15 = vld [vmem:[%s1834_s7 + $0x28] sm:$0xff]  ;;  %1001 = vst [vmem:[%s1849_s21 + $0x8] sm:$0xff] %v745_v7  ;;  %v748_v16 = vadd.f32 %v492_v13, %v236_v11  ;;  %v238_v18 = vld [vmem:[%s1827_s5 + $0x30] sm:$0xff]  ;;  %s1637_s15 = smov [#allocation7]  }
  0x59   : > { %1002 = vst [vmem:[%s1849_s21 + $0x10] sm:$0xff] %v746_v8  ;;  %v749_v17 = vadd.f32 %v493_v15, %v237_v14  ;;  %v494_v19 = vld [vmem:[%s1834_s7 + $0x30] sm:$0xff]  ;;  %v239_v20 = vld [vmem:[%s1827_s5 + $0x38] sm:$0xff]  ;;  %v240_v23 = vld [vmem:[%s1827_s5 + $0x40] sm:$0xff]  ;;  %p1547_p12 = pnand %p1546_p0, %p2679_p3  ;;  %s1549_s26 = sshll.u32 %s1637_s15, 4  ;;  %s1550_s26 = int_to_ptr.vmem [resolvable:$false] %s1549_s26 }
  0x5a   : > { %1003 = vst [vmem:[%s1849_s21 + $0x18] sm:$0xff] %v747_v12  ;;  %v750_v21 = vadd.f32 %v494_v19, %v238_v18  ;;  %v495_v22 = vld [vmem:[%s1834_s7 + $0x38] sm:$0xff]  ;;  %v496_v24 = vld [vmem:[%s1834_s7 + $0x40] sm:$0xff]  ;;  %1004 = vst [vmem:[%s1849_s21 + $0x20] sm:$0xff] %v748_v16  ;;  %s1551_s16 = scalar_lea.vmem %s1550_s26, 65536  ;;  %p1552_p7 = scmp.lt.s32.totalorder %s2613_s18, %s1550_s26 }
  0x5b   : > { %1005 = vst [vmem:[%s1849_s21 + $0x28] sm:$0xff] %v749_v17  ;;  %v751_v25 = vadd.f32 %v495_v22, %v239_v20  ;;  %v752_v26 = vadd.f32 %v496_v24, %v240_v23  ;;  %v241_v27 = vld [vmem:[%s1827_s5 + $0x48] sm:$0xff]  ;;  %v242_v29 = vld [vmem:[%s1827_s5 + $0x50] sm:$0xff]  ;;  %v243_v32 = vld [vmem:[%s1827_s5 + $0x58] sm:$0xff]  ;;  %p1548_p13 = pneg %p1547_p12  ;;  %p1553_p10 = scmp.lt.s32.totalorder %s1551_s16, %s1545_s3 }
  0x5c   : > { %v497_v28 = vld [vmem:[%s1834_s7 + $0x48] sm:$0xff]  ;;  %1006 = vst [vmem:[%s1849_s21 + $0x30] sm:$0xff] %v750_v21  ;;  %v498_v31 = vld [vmem:[%s1834_s7 + $0x50] sm:$0xff]  ;;  %v499_v33 = vld [vmem:[%s1834_s7 + $0x58] sm:$0xff] }
  0x5d   : > { %v753_v30 = vadd.f32 %v497_v28, %v241_v27  ;;  %1007 = vst [vmem:[%s1849_s21 + $0x38] sm:$0xff] %v751_v25  ;;  %1008 = vst [vmem:[%s1849_s21 + $0x40] sm:$0xff] %v752_v26  ;;  %v754_v34 = vadd.f32 %v498_v31, %v242_v29  ;;  %v755_v35 = vadd.f32 %v499_v33, %v243_v32  ;;  %v244_v36 = vld [vmem:[%s1827_s5 + $0x60] sm:$0xff]  ;;  %v245_v38 = vld [vmem:[%s1827_s5 + $0x68] sm:$0xff]  ;;  %p1554_p9 = por %p1553_p10, %p1552_p7 }
  0x5e   : > { %v500_v37 = vld [vmem:[%s1834_s7 + $0x60] sm:$0xff]  ;;  %v501_v40 = vld [vmem:[%s1834_s7 + $0x68] sm:$0xff]  ;;  %v246_v41 = vld [vmem:[%s1827_s5 + $0x70] sm:$0xff] }
  0x5f   : > { %1009 = vst [vmem:[%s1849_s21 + $0x48] sm:$0xff] %v753_v30  ;;  %v756_v39 = vadd.f32 %v500_v37, %v244_v36  ;;  %v502_v42 = vld [vmem:[%s1834_s7 + $0x70] sm:$0xff]  ;;  %1010 = vst [vmem:[%s1849_s21 + $0x50] sm:$0xff] %v754_v34  ;;  %v757_v43 = vadd.f32 %v501_v40, %v245_v38  ;;  %v247_v45 = vld [vmem:[%s1827_s5 + $0x78] sm:$0xff]  ;;  %p1555_p11 = pnand %p1554_p9, %p1548_p13 }
  0x60   : > { %1011 = vst [vmem:[%s1849_s21 + $0x58] sm:$0xff] %v755_v35  ;;  %v758_v44 = vadd.f32 %v502_v42, %v246_v41  ;;  %v503_v46 = vld [vmem:[%s1834_s7 + $0x78] sm:$0xff]  ;;  %v248_v47 = vld [vmem:[%s1827_s5 + $0x80] sm:$0xff]  ;;  %v249_v50 = vld [vmem:[%s1827_s5 + $0x88] sm:$0xff] }
  0x61   : > { %1012 = vst [vmem:[%s1849_s21 + $0x60] sm:$0xff] %v756_v39  ;;  %v759_v48 = vadd.f32 %v503_v46, %v247_v45  ;;  %v504_v49 = vld [vmem:[%s1834_s7 + $0x80] sm:$0xff]  ;;  %v505_v51 = vld [vmem:[%s1834_s7 + $0x88] sm:$0xff]  ;;  %1013 = vst [vmem:[%s1849_s21 + $0x68] sm:$0xff] %v757_v43 }
  0x62   : > { %1014 = vst [vmem:[%s1849_s21 + $0x70] sm:$0xff] %v758_v44  ;;  %v760_v52 = vadd.f32 %v504_v49, %v248_v47  ;;  %v761_v53 = vadd.f32 %v505_v51, %v249_v50  ;;  %v250_v54 = vld [vmem:[%s1827_s5 + $0x90] sm:$0xff]  ;;  %v251_v56 = vld [vmem:[%s1827_s5 + $0x98] sm:$0xff]  ;;  %v252_v59 = vld [vmem:[%s1827_s5 + $0xa0] sm:$0xff] }
  0x63   : > { %v506_v55 = vld [vmem:[%s1834_s7 + $0x90] sm:$0xff]  ;;  %1015 = vst [vmem:[%s1849_s21 + $0x78] sm:$0xff] %v759_v48  ;;  %v507_v58 = vld [vmem:[%s1834_s7 + $0x98] sm:$0xff]  ;;  %v508_v60 = vld [vmem:[%s1834_s7 + $0xa0] sm:$0xff] }
  0x64   : > { %v762_v57 = vadd.f32 %v506_v55, %v250_v54  ;;  %1016 = vst [vmem:[%s1849_s21 + $0x80] sm:$0xff] %v760_v52  ;;  %1017 = vst [vmem:[%s1849_s21 + $0x88] sm:$0xff] %v761_v53  ;;  %v763_v61 = vadd.f32 %v507_v58, %v251_v56  ;;  %v764_v62 = vadd.f32 %v508_v60, %v252_v59  ;;  %v253_v63 = vld [vmem:[%s1827_s5 + $0xa8] sm:$0xff]  ;;  %v254_v1 = vld [vmem:[%s1827_s5 + $0xb0] sm:$0xff] }
  0x65   : > { %v509_v0 = vld [vmem:[%s1834_s7 + $0xa8] sm:$0xff]  ;;  %v510_v3 = vld [vmem:[%s1834_s7 + $0xb0] sm:$0xff]  ;;  %v255_v4 = vld [vmem:[%s1827_s5 + $0xb8] sm:$0xff] }
  0x66   : > { %1018 = vst [vmem:[%s1849_s21 + $0x90] sm:$0xff] %v762_v57  ;;  %v765_v2 = vadd.f32 %v509_v0, %v253_v63  ;;  %v511_v5 = vld [vmem:[%s1834_s7 + $0xb8] sm:$0xff]  ;;  %1019 = vst [vmem:[%s1849_s21 + $0x98] sm:$0xff] %v763_v61  ;;  %v766_v6 = vadd.f32 %v510_v3, %v254_v1  ;;  %v256_v8 = vld [vmem:[%s1827_s5 + $0xc0] sm:$0xff] }
  0x67   : > { %1020 = vst [vmem:[%s1849_s21 + $0xa0] sm:$0xff] %v764_v62  ;;  %v767_v7 = vadd.f32 %v511_v5, %v255_v4  ;;  %v512_v9 = vld [vmem:[%s1834_s7 + $0xc0] sm:$0xff]  ;;  %v257_v10 = vld [vmem:[%s1827_s5 + $0xc8] sm:$0xff]  ;;  %v258_v13 = vld [vmem:[%s1827_s5 + $0xd0] sm:$0xff] }
  0x68   : > { %1021 = vst [vmem:[%s1849_s21 + $0xa8] sm:$0xff] %v765_v2  ;;  %v768_v11 = vadd.f32 %v512_v9, %v256_v8  ;;  %v513_v12 = vld [vmem:[%s1834_s7 + $0xc8] sm:$0xff]  ;;  %v514_v14 = vld [vmem:[%s1834_s7 + $0xd0] sm:$0xff]  ;;  %1022 = vst [vmem:[%s1849_s21 + $0xb0] sm:$0xff] %v766_v6 }
  0x69   : > { %1023 = vst [vmem:[%s1849_s21 + $0xb8] sm:$0xff] %v767_v7  ;;  %v769_v15 = vadd.f32 %v513_v12, %v257_v10  ;;  %v770_v16 = vadd.f32 %v514_v14, %v258_v13  ;;  %v259_v17 = vld [vmem:[%s1827_s5 + $0xd8] sm:$0xff]  ;;  %v260_v19 = vld [vmem:[%s1827_s5 + $0xe0] sm:$0xff]  ;;  %v261_v22 = vld [vmem:[%s1827_s5 + $0xe8] sm:$0xff] }
  0x6a   : > { %v515_v18 = vld [vmem:[%s1834_s7 + $0xd8] sm:$0xff]  ;;  %1024 = vst [vmem:[%s1849_s21 + $0xc0] sm:$0xff] %v768_v11  ;;  %v516_v21 = vld [vmem:[%s1834_s7 + $0xe0] sm:$0xff]  ;;  %v517_v23 = vld [vmem:[%s1834_s7 + $0xe8] sm:$0xff] }
  0x6b   : > { %v771_v20 = vadd.f32 %v515_v18, %v259_v17  ;;  %1025 = vst [vmem:[%s1849_s21 + $0xc8] sm:$0xff] %v769_v15  ;;  %1026 = vst [vmem:[%s1849_s21 + $0xd0] sm:$0xff] %v770_v16  ;;  %v772_v24 = vadd.f32 %v516_v21, %v260_v19  ;;  %v773_v25 = vadd.f32 %v517_v23, %v261_v22  ;;  %v262_v26 = vld [vmem:[%s1827_s5 + $0xf0] sm:$0xff]  ;;  %v263_v28 = vld [vmem:[%s1827_s5 + $0xf8] sm:$0xff] }
  0x6c   : > { %v518_v27 = vld [vmem:[%s1834_s7 + $0xf0] sm:$0xff]  ;;  %v519_v30 = vld [vmem:[%s1834_s7 + $0xf8] sm:$0xff]  ;;  %v264_v31 = vld [vmem:[%s1827_s5 + $0x100] sm:$0xff] }
  0x6d   : > { %1027 = vst [vmem:[%s1849_s21 + $0xd8] sm:$0xff] %v771_v20  ;;  %v774_v29 = vadd.f32 %v518_v27, %v262_v26  ;;  %v520_v32 = vld [vmem:[%s1834_s7 + $0x100] sm:$0xff]  ;;  %1028 = vst [vmem:[%s1849_s21 + $0xe0] sm:$0xff] %v772_v24  ;;  %v775_v33 = vadd.f32 %v519_v30, %v263_v28  ;;  %v265_v35 = vld [vmem:[%s1827_s5 + $0x108] sm:$0xff] }
  0x6e   : > { %1029 = vst [vmem:[%s1849_s21 + $0xe8] sm:$0xff] %v773_v25  ;;  %v776_v34 = vadd.f32 %v520_v32, %v264_v31  ;;  %v521_v36 = vld [vmem:[%s1834_s7 + $0x108] sm:$0xff]  ;;  %v266_v37 = vld [vmem:[%s1827_s5 + $0x110] sm:$0xff]  ;;  %v267_v40 = vld [vmem:[%s1827_s5 + $0x118] sm:$0xff] }
  0x6f   : > { %1030 = vst [vmem:[%s1849_s21 + $0xf0] sm:$0xff] %v774_v29  ;;  %v777_v38 = vadd.f32 %v521_v36, %v265_v35  ;;  %v522_v39 = vld [vmem:[%s1834_s7 + $0x110] sm:$0xff]  ;;  %v523_v41 = vld [vmem:[%s1834_s7 + $0x118] sm:$0xff]  ;;  %1031 = vst [vmem:[%s1849_s21 + $0xf8] sm:$0xff] %v775_v33 }
  0x70   : > { %1032 = vst [vmem:[%s1849_s21 + $0x100] sm:$0xff] %v776_v34  ;;  %v778_v42 = vadd.f32 %v522_v39, %v266_v37  ;;  %v779_v43 = vadd.f32 %v523_v41, %v267_v40  ;;  %v268_v44 = vld [vmem:[%s1827_s5 + $0x120] sm:$0xff]  ;;  %v269_v46 = vld [vmem:[%s1827_s5 + $0x128] sm:$0xff]  ;;  %v270_v49 = vld [vmem:[%s1827_s5 + $0x130] sm:$0xff] }
  0x71   : > { %v524_v45 = vld [vmem:[%s1834_s7 + $0x120] sm:$0xff]  ;;  %1033 = vst [vmem:[%s1849_s21 + $0x108] sm:$0xff] %v777_v38  ;;  %v525_v48 = vld [vmem:[%s1834_s7 + $0x128] sm:$0xff]  ;;  %v526_v50 = vld [vmem:[%s1834_s7 + $0x130] sm:$0xff] }
  0x72   : > { %v780_v47 = vadd.f32 %v524_v45, %v268_v44  ;;  %1034 = vst [vmem:[%s1849_s21 + $0x110] sm:$0xff] %v778_v42  ;;  %1035 = vst [vmem:[%s1849_s21 + $0x118] sm:$0xff] %v779_v43  ;;  %v781_v51 = vadd.f32 %v525_v48, %v269_v46  ;;  %v782_v52 = vadd.f32 %v526_v50, %v270_v49  ;;  %v271_v53 = vld [vmem:[%s1827_s5 + $0x138] sm:$0xff]  ;;  %v272_v55 = vld [vmem:[%s1827_s5 + $0x140] sm:$0xff] }
  0x73   : > { %v527_v54 = vld [vmem:[%s1834_s7 + $0x138] sm:$0xff]  ;;  %v528_v57 = vld [vmem:[%s1834_s7 + $0x140] sm:$0xff]  ;;  %v273_v58 = vld [vmem:[%s1827_s5 + $0x148] sm:$0xff] }
  0x74   : > { %1036 = vst [vmem:[%s1849_s21 + $0x120] sm:$0xff] %v780_v47  ;;  %v783_v56 = vadd.f32 %v527_v54, %v271_v53  ;;  %v529_v59 = vld [vmem:[%s1834_s7 + $0x148] sm:$0xff]  ;;  %1037 = vst [vmem:[%s1849_s21 + $0x128] sm:$0xff] %v781_v51  ;;  %v784_v60 = vadd.f32 %v528_v57, %v272_v55  ;;  %v274_v62 = vld [vmem:[%s1827_s5 + $0x150] sm:$0xff] }
  0x75   : > { %1038 = vst [vmem:[%s1849_s21 + $0x130] sm:$0xff] %v782_v52  ;;  %v785_v61 = vadd.f32 %v529_v59, %v273_v58  ;;  %v530_v63 = vld [vmem:[%s1834_s7 + $0x150] sm:$0xff]  ;;  %v275_v0 = vld [vmem:[%s1827_s5 + $0x158] sm:$0xff]  ;;  %v276_v3 = vld [vmem:[%s1827_s5 + $0x160] sm:$0xff] }
  0x76   : > { %1039 = vst [vmem:[%s1849_s21 + $0x138] sm:$0xff] %v783_v56  ;;  %v786_v1 = vadd.f32 %v530_v63, %v274_v62  ;;  %v531_v2 = vld [vmem:[%s1834_s7 + $0x158] sm:$0xff]  ;;  %v532_v4 = vld [vmem:[%s1834_s7 + $0x160] sm:$0xff]  ;;  %1040 = vst [vmem:[%s1849_s21 + $0x140] sm:$0xff] %v784_v60 }
  0x77   : > { %1041 = vst [vmem:[%s1849_s21 + $0x148] sm:$0xff] %v785_v61  ;;  %v787_v5 = vadd.f32 %v531_v2, %v275_v0  ;;  %v788_v6 = vadd.f32 %v532_v4, %v276_v3  ;;  %v277_v7 = vld [vmem:[%s1827_s5 + $0x168] sm:$0xff]  ;;  %v278_v9 = vld [vmem:[%s1827_s5 + $0x170] sm:$0xff]  ;;  %v279_v12 = vld [vmem:[%s1827_s5 + $0x178] sm:$0xff] }
  0x78   : > { %v533_v8 = vld [vmem:[%s1834_s7 + $0x168] sm:$0xff]  ;;  %1042 = vst [vmem:[%s1849_s21 + $0x150] sm:$0xff] %v786_v1  ;;  %v534_v11 = vld [vmem:[%s1834_s7 + $0x170] sm:$0xff]  ;;  %v535_v13 = vld [vmem:[%s1834_s7 + $0x178] sm:$0xff] }
  0x79   : > { %v789_v10 = vadd.f32 %v533_v8, %v277_v7  ;;  %1043 = vst [vmem:[%s1849_s21 + $0x158] sm:$0xff] %v787_v5  ;;  %1044 = vst [vmem:[%s1849_s21 + $0x160] sm:$0xff] %v788_v6  ;;  %v790_v14 = vadd.f32 %v534_v11, %v278_v9  ;;  %v791_v15 = vadd.f32 %v535_v13, %v279_v12  ;;  %v280_v16 = vld [vmem:[%s1827_s5 + $0x180] sm:$0xff]  ;;  %v281_v18 = vld [vmem:[%s1827_s5 + $0x188] sm:$0xff] }
  0x7a   : > { %v536_v17 = vld [vmem:[%s1834_s7 + $0x180] sm:$0xff]  ;;  %v537_v20 = vld [vmem:[%s1834_s7 + $0x188] sm:$0xff]  ;;  %v282_v21 = vld [vmem:[%s1827_s5 + $0x190] sm:$0xff] }
  0x7b   : > { %1045 = vst [vmem:[%s1849_s21 + $0x168] sm:$0xff] %v789_v10  ;;  %v792_v19 = vadd.f32 %v536_v17, %v280_v16  ;;  %v538_v22 = vld [vmem:[%s1834_s7 + $0x190] sm:$0xff]  ;;  %1046 = vst [vmem:[%s1849_s21 + $0x170] sm:$0xff] %v790_v14  ;;  %v793_v23 = vadd.f32 %v537_v20, %v281_v18  ;;  %v283_v25 = vld [vmem:[%s1827_s5 + $0x198] sm:$0xff] }
  0x7c   : > { %1047 = vst [vmem:[%s1849_s21 + $0x178] sm:$0xff] %v791_v15  ;;  %v794_v24 = vadd.f32 %v538_v22, %v282_v21  ;;  %v539_v26 = vld [vmem:[%s1834_s7 + $0x198] sm:$0xff]  ;;  %v284_v27 = vld [vmem:[%s1827_s5 + $0x1a0] sm:$0xff]  ;;  %v285_v30 = vld [vmem:[%s1827_s5 + $0x1a8] sm:$0xff] }
  0x7d   : > { %1048 = vst [vmem:[%s1849_s21 + $0x180] sm:$0xff] %v792_v19  ;;  %v795_v28 = vadd.f32 %v539_v26, %v283_v25  ;;  %v540_v29 = vld [vmem:[%s1834_s7 + $0x1a0] sm:$0xff]  ;;  %v541_v31 = vld [vmem:[%s1834_s7 + $0x1a8] sm:$0xff]  ;;  %1049 = vst [vmem:[%s1849_s21 + $0x188] sm:$0xff] %v793_v23 }
  0x7e   : > { %1050 = vst [vmem:[%s1849_s21 + $0x190] sm:$0xff] %v794_v24  ;;  %v796_v32 = vadd.f32 %v540_v29, %v284_v27  ;;  %v797_v33 = vadd.f32 %v541_v31, %v285_v30  ;;  %v286_v34 = vld [vmem:[%s1827_s5 + $0x1b0] sm:$0xff]  ;;  %v287_v36 = vld [vmem:[%s1827_s5 + $0x1b8] sm:$0xff]  ;;  %v288_v39 = vld [vmem:[%s1827_s5 + $0x1c0] sm:$0xff] }
  0x7f   : > { %v542_v35 = vld [vmem:[%s1834_s7 + $0x1b0] sm:$0xff]  ;;  %1051 = vst [vmem:[%s1849_s21 + $0x198] sm:$0xff] %v795_v28  ;;  %v543_v38 = vld [vmem:[%s1834_s7 + $0x1b8] sm:$0xff]  ;;  %v544_v40 = vld [vmem:[%s1834_s7 + $0x1c0] sm:$0xff] }
  0x80   : > { %v798_v37 = vadd.f32 %v542_v35, %v286_v34  ;;  %1052 = vst [vmem:[%s1849_s21 + $0x1a0] sm:$0xff] %v796_v32  ;;  %1053 = vst [vmem:[%s1849_s21 + $0x1a8] sm:$0xff] %v797_v33  ;;  %v799_v41 = vadd.f32 %v543_v38, %v287_v36  ;;  %v800_v42 = vadd.f32 %v544_v40, %v288_v39  ;;  %v289_v43 = vld [vmem:[%s1827_s5 + $0x1c8] sm:$0xff]  ;;  %v290_v45 = vld [vmem:[%s1827_s5 + $0x1d0] sm:$0xff] }
  0x81   : > { %v545_v44 = vld [vmem:[%s1834_s7 + $0x1c8] sm:$0xff]  ;;  %v546_v47 = vld [vmem:[%s1834_s7 + $0x1d0] sm:$0xff]  ;;  %v291_v48 = vld [vmem:[%s1827_s5 + $0x1d8] sm:$0xff] }
  0x82   : > { %1054 = vst [vmem:[%s1849_s21 + $0x1b0] sm:$0xff] %v798_v37  ;;  %v801_v46 = vadd.f32 %v545_v44, %v289_v43  ;;  %v547_v49 = vld [vmem:[%s1834_s7 + $0x1d8] sm:$0xff]  ;;  %1055 = vst [vmem:[%s1849_s21 + $0x1b8] sm:$0xff] %v799_v41  ;;  %v802_v50 = vadd.f32 %v546_v47, %v290_v45  ;;  %v292_v52 = vld [vmem:[%s1827_s5 + $0x1e0] sm:$0xff] }
  0x83   : > { %1056 = vst [vmem:[%s1849_s21 + $0x1c0] sm:$0xff] %v800_v42  ;;  %v803_v51 = vadd.f32 %v547_v49, %v291_v48  ;;  %v548_v53 = vld [vmem:[%s1834_s7 + $0x1e0] sm:$0xff]  ;;  %v293_v54 = vld [vmem:[%s1827_s5 + $0x1e8] sm:$0xff]  ;;  %v294_v57 = vld [vmem:[%s1827_s5 + $0x1f0] sm:$0xff] }
  0x84   : > { %1057 = vst [vmem:[%s1849_s21 + $0x1c8] sm:$0xff] %v801_v46  ;;  %v804_v55 = vadd.f32 %v548_v53, %v292_v52  ;;  %v549_v56 = vld [vmem:[%s1834_s7 + $0x1e8] sm:$0xff]  ;;  %v550_v58 = vld [vmem:[%s1834_s7 + $0x1f0] sm:$0xff]  ;;  %1058 = vst [vmem:[%s1849_s21 + $0x1d0] sm:$0xff] %v802_v50 }
  0x85   : > { %1059 = vst [vmem:[%s1849_s21 + $0x1d8] sm:$0xff] %v803_v51  ;;  %v805_v59 = vadd.f32 %v549_v56, %v293_v54  ;;  %v806_v60 = vadd.f32 %v550_v58, %v294_v57  ;;  %v295_v61 = vld [vmem:[%s1827_s5 + $0x1f8] sm:$0xff]  ;;  %v296_v63 = vld [vmem:[%s1827_s5 + $0x200] sm:$0xff]  ;;  %v297_v2 = vld [vmem:[%s1827_s5 + $0x208] sm:$0xff] }
  0x86   : > { %v551_v62 = vld [vmem:[%s1834_s7 + $0x1f8] sm:$0xff]  ;;  %1060 = vst [vmem:[%s1849_s21 + $0x1e0] sm:$0xff] %v804_v55  ;;  %v552_v1 = vld [vmem:[%s1834_s7 + $0x200] sm:$0xff]  ;;  %v553_v3 = vld [vmem:[%s1834_s7 + $0x208] sm:$0xff] }
  0x87   : > { %v807_v0 = vadd.f32 %v551_v62, %v295_v61  ;;  %1061 = vst [vmem:[%s1849_s21 + $0x1e8] sm:$0xff] %v805_v59  ;;  %1062 = vst [vmem:[%s1849_s21 + $0x1f0] sm:$0xff] %v806_v60  ;;  %v808_v4 = vadd.f32 %v552_v1, %v296_v63  ;;  %v809_v5 = vadd.f32 %v553_v3, %v297_v2  ;;  %v298_v6 = vld [vmem:[%s1827_s5 + $0x210] sm:$0xff]  ;;  %v299_v8 = vld [vmem:[%s1827_s5 + $0x218] sm:$0xff] }
  0x88   : > { %v554_v7 = vld [vmem:[%s1834_s7 + $0x210] sm:$0xff]  ;;  %v555_v10 = vld [vmem:[%s1834_s7 + $0x218] sm:$0xff]  ;;  %v300_v11 = vld [vmem:[%s1827_s5 + $0x220] sm:$0xff] }
  0x89   : > { %1063 = vst [vmem:[%s1849_s21 + $0x1f8] sm:$0xff] %v807_v0  ;;  %v810_v9 = vadd.f32 %v554_v7, %v298_v6  ;;  %v556_v12 = vld [vmem:[%s1834_s7 + $0x220] sm:$0xff]  ;;  %1064 = vst [vmem:[%s1849_s21 + $0x200] sm:$0xff] %v808_v4  ;;  %v811_v13 = vadd.f32 %v555_v10, %v299_v8  ;;  %v301_v15 = vld [vmem:[%s1827_s5 + $0x228] sm:$0xff] }
  0x8a   : > { %1065 = vst [vmem:[%s1849_s21 + $0x208] sm:$0xff] %v809_v5  ;;  %v812_v14 = vadd.f32 %v556_v12, %v300_v11  ;;  %v557_v16 = vld [vmem:[%s1834_s7 + $0x228] sm:$0xff]  ;;  %v302_v17 = vld [vmem:[%s1827_s5 + $0x230] sm:$0xff]  ;;  %v303_v20 = vld [vmem:[%s1827_s5 + $0x238] sm:$0xff] }
  0x8b   : > { %1066 = vst [vmem:[%s1849_s21 + $0x210] sm:$0xff] %v810_v9  ;;  %v813_v18 = vadd.f32 %v557_v16, %v301_v15  ;;  %v558_v19 = vld [vmem:[%s1834_s7 + $0x230] sm:$0xff]  ;;  %v559_v21 = vld [vmem:[%s1834_s7 + $0x238] sm:$0xff]  ;;  %1067 = vst [vmem:[%s1849_s21 + $0x218] sm:$0xff] %v811_v13 }
  0x8c   : > { %1068 = vst [vmem:[%s1849_s21 + $0x220] sm:$0xff] %v812_v14  ;;  %v814_v22 = vadd.f32 %v558_v19, %v302_v17  ;;  %v815_v23 = vadd.f32 %v559_v21, %v303_v20  ;;  %v304_v24 = vld [vmem:[%s1827_s5 + $0x240] sm:$0xff]  ;;  %v305_v26 = vld [vmem:[%s1827_s5 + $0x248] sm:$0xff]  ;;  %v306_v29 = vld [vmem:[%s1827_s5 + $0x250] sm:$0xff] }
  0x8d   : > { %v560_v25 = vld [vmem:[%s1834_s7 + $0x240] sm:$0xff]  ;;  %1069 = vst [vmem:[%s1849_s21 + $0x228] sm:$0xff] %v813_v18  ;;  %v561_v28 = vld [vmem:[%s1834_s7 + $0x248] sm:$0xff]  ;;  %v562_v30 = vld [vmem:[%s1834_s7 + $0x250] sm:$0xff] }
  0x8e   : > { %v816_v27 = vadd.f32 %v560_v25, %v304_v24  ;;  %1070 = vst [vmem:[%s1849_s21 + $0x230] sm:$0xff] %v814_v22  ;;  %1071 = vst [vmem:[%s1849_s21 + $0x238] sm:$0xff] %v815_v23  ;;  %v817_v31 = vadd.f32 %v561_v28, %v305_v26  ;;  %v818_v32 = vadd.f32 %v562_v30, %v306_v29  ;;  %v307_v33 = vld [vmem:[%s1827_s5 + $0x258] sm:$0xff]  ;;  %v308_v35 = vld [vmem:[%s1827_s5 + $0x260] sm:$0xff] }
  0x8f   : > { %v563_v34 = vld [vmem:[%s1834_s7 + $0x258] sm:$0xff]  ;;  %v564_v37 = vld [vmem:[%s1834_s7 + $0x260] sm:$0xff]  ;;  %v309_v38 = vld [vmem:[%s1827_s5 + $0x268] sm:$0xff] }
  0x90   : > { %1072 = vst [vmem:[%s1849_s21 + $0x240] sm:$0xff] %v816_v27  ;;  %v819_v36 = vadd.f32 %v563_v34, %v307_v33  ;;  %v565_v39 = vld [vmem:[%s1834_s7 + $0x268] sm:$0xff]  ;;  %1073 = vst [vmem:[%s1849_s21 + $0x248] sm:$0xff] %v817_v31  ;;  %v820_v40 = vadd.f32 %v564_v37, %v308_v35  ;;  %v310_v42 = vld [vmem:[%s1827_s5 + $0x270] sm:$0xff] }
  0x91   : > { %1074 = vst [vmem:[%s1849_s21 + $0x250] sm:$0xff] %v818_v32  ;;  %v821_v41 = vadd.f32 %v565_v39, %v309_v38  ;;  %v566_v43 = vld [vmem:[%s1834_s7 + $0x270] sm:$0xff]  ;;  %v311_v44 = vld [vmem:[%s1827_s5 + $0x278] sm:$0xff]  ;;  %v312_v47 = vld [vmem:[%s1827_s5 + $0x280] sm:$0xff] }
  0x92   : > { %1075 = vst [vmem:[%s1849_s21 + $0x258] sm:$0xff] %v819_v36  ;;  %v822_v45 = vadd.f32 %v566_v43, %v310_v42  ;;  %v567_v46 = vld [vmem:[%s1834_s7 + $0x278] sm:$0xff]  ;;  %v568_v48 = vld [vmem:[%s1834_s7 + $0x280] sm:$0xff]  ;;  %1076 = vst [vmem:[%s1849_s21 + $0x260] sm:$0xff] %v820_v40 }
  0x93   : > { %1077 = vst [vmem:[%s1849_s21 + $0x268] sm:$0xff] %v821_v41  ;;  %v823_v49 = vadd.f32 %v567_v46, %v311_v44  ;;  %v824_v50 = vadd.f32 %v568_v48, %v312_v47  ;;  %v313_v51 = vld [vmem:[%s1827_s5 + $0x288] sm:$0xff]  ;;  %v314_v53 = vld [vmem:[%s1827_s5 + $0x290] sm:$0xff]  ;;  %v315_v56 = vld [vmem:[%s1827_s5 + $0x298] sm:$0xff] }
  0x94   : > { %v569_v52 = vld [vmem:[%s1834_s7 + $0x288] sm:$0xff]  ;;  %1078 = vst [vmem:[%s1849_s21 + $0x270] sm:$0xff] %v822_v45  ;;  %v570_v55 = vld [vmem:[%s1834_s7 + $0x290] sm:$0xff]  ;;  %v571_v57 = vld [vmem:[%s1834_s7 + $0x298] sm:$0xff] }
  0x95   : > { %v825_v54 = vadd.f32 %v569_v52, %v313_v51  ;;  %1079 = vst [vmem:[%s1849_s21 + $0x278] sm:$0xff] %v823_v49  ;;  %1080 = vst [vmem:[%s1849_s21 + $0x280] sm:$0xff] %v824_v50  ;;  %v826_v58 = vadd.f32 %v570_v55, %v314_v53  ;;  %v827_v59 = vadd.f32 %v571_v57, %v315_v56  ;;  %v316_v60 = vld [vmem:[%s1827_s5 + $0x2a0] sm:$0xff]  ;;  %v317_v62 = vld [vmem:[%s1827_s5 + $0x2a8] sm:$0xff] }
  0x96   : > { %v572_v61 = vld [vmem:[%s1834_s7 + $0x2a0] sm:$0xff]  ;;  %v573_v0 = vld [vmem:[%s1834_s7 + $0x2a8] sm:$0xff]  ;;  %v318_v1 = vld [vmem:[%s1827_s5 + $0x2b0] sm:$0xff] }
  0x97   : > { %1081 = vst [vmem:[%s1849_s21 + $0x288] sm:$0xff] %v825_v54  ;;  %v828_v63 = vadd.f32 %v572_v61, %v316_v60  ;;  %v574_v2 = vld [vmem:[%s1834_s7 + $0x2b0] sm:$0xff]  ;;  %1082 = vst [vmem:[%s1849_s21 + $0x290] sm:$0xff] %v826_v58  ;;  %v829_v3 = vadd.f32 %v573_v0, %v317_v62  ;;  %v319_v5 = vld [vmem:[%s1827_s5 + $0x2b8] sm:$0xff] }
  0x98   : > { %1083 = vst [vmem:[%s1849_s21 + $0x298] sm:$0xff] %v827_v59  ;;  %v830_v4 = vadd.f32 %v574_v2, %v318_v1  ;;  %v575_v6 = vld [vmem:[%s1834_s7 + $0x2b8] sm:$0xff]  ;;  %v320_v7 = vld [vmem:[%s1827_s5 + $0x2c0] sm:$0xff]  ;;  %v321_v10 = vld [vmem:[%s1827_s5 + $0x2c8] sm:$0xff] }
  0x99   : > { %1084 = vst [vmem:[%s1849_s21 + $0x2a0] sm:$0xff] %v828_v63  ;;  %v831_v8 = vadd.f32 %v575_v6, %v319_v5  ;;  %v576_v9 = vld [vmem:[%s1834_s7 + $0x2c0] sm:$0xff]  ;;  %v577_v11 = vld [vmem:[%s1834_s7 + $0x2c8] sm:$0xff]  ;;  %1085 = vst [vmem:[%s1849_s21 + $0x2a8] sm:$0xff] %v829_v3 }
  0x9a   : > { %1086 = vst [vmem:[%s1849_s21 + $0x2b0] sm:$0xff] %v830_v4  ;;  %v832_v12 = vadd.f32 %v576_v9, %v320_v7  ;;  %v833_v13 = vadd.f32 %v577_v11, %v321_v10  ;;  %v322_v14 = vld [vmem:[%s1827_s5 + $0x2d0] sm:$0xff]  ;;  %v323_v16 = vld [vmem:[%s1827_s5 + $0x2d8] sm:$0xff]  ;;  %v324_v19 = vld [vmem:[%s1827_s5 + $0x2e0] sm:$0xff] }
  0x9b   : > { %v578_v15 = vld [vmem:[%s1834_s7 + $0x2d0] sm:$0xff]  ;;  %1087 = vst [vmem:[%s1849_s21 + $0x2b8] sm:$0xff] %v831_v8  ;;  %v579_v18 = vld [vmem:[%s1834_s7 + $0x2d8] sm:$0xff]  ;;  %v580_v20 = vld [vmem:[%s1834_s7 + $0x2e0] sm:$0xff] }
  0x9c   : > { %v834_v17 = vadd.f32 %v578_v15, %v322_v14  ;;  %1088 = vst [vmem:[%s1849_s21 + $0x2c0] sm:$0xff] %v832_v12  ;;  %1089 = vst [vmem:[%s1849_s21 + $0x2c8] sm:$0xff] %v833_v13  ;;  %v835_v21 = vadd.f32 %v579_v18, %v323_v16  ;;  %v836_v22 = vadd.f32 %v580_v20, %v324_v19  ;;  %v325_v23 = vld [vmem:[%s1827_s5 + $0x2e8] sm:$0xff]  ;;  %v326_v25 = vld [vmem:[%s1827_s5 + $0x2f0] sm:$0xff] }
  0x9d   : > { %v581_v24 = vld [vmem:[%s1834_s7 + $0x2e8] sm:$0xff]  ;;  %v582_v27 = vld [vmem:[%s1834_s7 + $0x2f0] sm:$0xff]  ;;  %v327_v28 = vld [vmem:[%s1827_s5 + $0x2f8] sm:$0xff] }
  0x9e   : > { %1090 = vst [vmem:[%s1849_s21 + $0x2d0] sm:$0xff] %v834_v17  ;;  %v837_v26 = vadd.f32 %v581_v24, %v325_v23  ;;  %v583_v29 = vld [vmem:[%s1834_s7 + $0x2f8] sm:$0xff]  ;;  %1091 = vst [vmem:[%s1849_s21 + $0x2d8] sm:$0xff] %v835_v21  ;;  %v838_v30 = vadd.f32 %v582_v27, %v326_v25  ;;  %v328_v32 = vld [vmem:[%s1827_s5 + $0x300] sm:$0xff] }
  0x9f   : > { %1092 = vst [vmem:[%s1849_s21 + $0x2e0] sm:$0xff] %v836_v22  ;;  %v839_v31 = vadd.f32 %v583_v29, %v327_v28  ;;  %v584_v33 = vld [vmem:[%s1834_s7 + $0x300] sm:$0xff]  ;;  %v329_v34 = vld [vmem:[%s1827_s5 + $0x308] sm:$0xff]  ;;  %v330_v37 = vld [vmem:[%s1827_s5 + $0x310] sm:$0xff] }
  0xa0   : > { %1093 = vst [vmem:[%s1849_s21 + $0x2e8] sm:$0xff] %v837_v26  ;;  %v840_v35 = vadd.f32 %v584_v33, %v328_v32  ;;  %v585_v36 = vld [vmem:[%s1834_s7 + $0x308] sm:$0xff]  ;;  %v586_v38 = vld [vmem:[%s1834_s7 + $0x310] sm:$0xff]  ;;  %1094 = vst [vmem:[%s1849_s21 + $0x2f0] sm:$0xff] %v838_v30 }
  0xa1   : > { %1095 = vst [vmem:[%s1849_s21 + $0x2f8] sm:$0xff] %v839_v31  ;;  %v841_v39 = vadd.f32 %v585_v36, %v329_v34  ;;  %v842_v40 = vadd.f32 %v586_v38, %v330_v37  ;;  %v331_v41 = vld [vmem:[%s1827_s5 + $0x318] sm:$0xff]  ;;  %v332_v43 = vld [vmem:[%s1827_s5 + $0x320] sm:$0xff]  ;;  %v333_v46 = vld [vmem:[%s1827_s5 + $0x328] sm:$0xff] }
  0xa2   : > { %v587_v42 = vld [vmem:[%s1834_s7 + $0x318] sm:$0xff]  ;;  %1096 = vst [vmem:[%s1849_s21 + $0x300] sm:$0xff] %v840_v35  ;;  %v588_v45 = vld [vmem:[%s1834_s7 + $0x320] sm:$0xff]  ;;  %v589_v47 = vld [vmem:[%s1834_s7 + $0x328] sm:$0xff] }
  0xa3   : > { %v843_v44 = vadd.f32 %v587_v42, %v331_v41  ;;  %1097 = vst [vmem:[%s1849_s21 + $0x308] sm:$0xff] %v841_v39  ;;  %1098 = vst [vmem:[%s1849_s21 + $0x310] sm:$0xff] %v842_v40  ;;  %v844_v48 = vadd.f32 %v588_v45, %v332_v43  ;;  %v845_v49 = vadd.f32 %v589_v47, %v333_v46  ;;  %v334_v50 = vld [vmem:[%s1827_s5 + $0x330] sm:$0xff]  ;;  %v335_v52 = vld [vmem:[%s1827_s5 + $0x338] sm:$0xff] }
  0xa4   : > { %v590_v51 = vld [vmem:[%s1834_s7 + $0x330] sm:$0xff]  ;;  %v591_v54 = vld [vmem:[%s1834_s7 + $0x338] sm:$0xff]  ;;  %v336_v55 = vld [vmem:[%s1827_s5 + $0x340] sm:$0xff] }
  0xa5   : > { %1099 = vst [vmem:[%s1849_s21 + $0x318] sm:$0xff] %v843_v44  ;;  %v846_v53 = vadd.f32 %v590_v51, %v334_v50  ;;  %v592_v56 = vld [vmem:[%s1834_s7 + $0x340] sm:$0xff]  ;;  %1100 = vst [vmem:[%s1849_s21 + $0x320] sm:$0xff] %v844_v48  ;;  %v847_v57 = vadd.f32 %v591_v54, %v335_v52  ;;  %v337_v59 = vld [vmem:[%s1827_s5 + $0x348] sm:$0xff] }
  0xa6   : > { %1101 = vst [vmem:[%s1849_s21 + $0x328] sm:$0xff] %v845_v49  ;;  %v848_v58 = vadd.f32 %v592_v56, %v336_v55  ;;  %v593_v60 = vld [vmem:[%s1834_s7 + $0x348] sm:$0xff]  ;;  %v338_v61 = vld [vmem:[%s1827_s5 + $0x350] sm:$0xff]  ;;  %v339_v0 = vld [vmem:[%s1827_s5 + $0x358] sm:$0xff] }
  0xa7   : > { %1102 = vst [vmem:[%s1849_s21 + $0x330] sm:$0xff] %v846_v53  ;;  %v849_v62 = vadd.f32 %v593_v60, %v337_v59  ;;  %v594_v63 = vld [vmem:[%s1834_s7 + $0x350] sm:$0xff]  ;;  %v595_v1 = vld [vmem:[%s1834_s7 + $0x358] sm:$0xff]  ;;  %1103 = vst [vmem:[%s1849_s21 + $0x338] sm:$0xff] %v847_v57 }
  0xa8   : > { %1104 = vst [vmem:[%s1849_s21 + $0x340] sm:$0xff] %v848_v58  ;;  %v850_v2 = vadd.f32 %v594_v63, %v338_v61  ;;  %v851_v3 = vadd.f32 %v595_v1, %v339_v0  ;;  %v340_v4 = vld [vmem:[%s1827_s5 + $0x360] sm:$0xff]  ;;  %v341_v6 = vld [vmem:[%s1827_s5 + $0x368] sm:$0xff]  ;;  %v342_v9 = vld [vmem:[%s1827_s5 + $0x370] sm:$0xff] }
  0xa9   : > { %v596_v5 = vld [vmem:[%s1834_s7 + $0x360] sm:$0xff]  ;;  %1105 = vst [vmem:[%s1849_s21 + $0x348] sm:$0xff] %v849_v62  ;;  %v597_v8 = vld [vmem:[%s1834_s7 + $0x368] sm:$0xff]  ;;  %v598_v10 = vld [vmem:[%s1834_s7 + $0x370] sm:$0xff] }
  0xaa   : > { %v852_v7 = vadd.f32 %v596_v5, %v340_v4  ;;  %1106 = vst [vmem:[%s1849_s21 + $0x350] sm:$0xff] %v850_v2  ;;  %1107 = vst [vmem:[%s1849_s21 + $0x358] sm:$0xff] %v851_v3  ;;  %v853_v11 = vadd.f32 %v597_v8, %v341_v6  ;;  %v854_v12 = vadd.f32 %v598_v10, %v342_v9  ;;  %v343_v13 = vld [vmem:[%s1827_s5 + $0x378] sm:$0xff]  ;;  %v344_v15 = vld [vmem:[%s1827_s5 + $0x380] sm:$0xff] }
  0xab   : > { %v599_v14 = vld [vmem:[%s1834_s7 + $0x378] sm:$0xff]  ;;  %v600_v17 = vld [vmem:[%s1834_s7 + $0x380] sm:$0xff]  ;;  %v345_v18 = vld [vmem:[%s1827_s5 + $0x388] sm:$0xff] }
  0xac   : > { %1108 = vst [vmem:[%s1849_s21 + $0x360] sm:$0xff] %v852_v7  ;;  %v855_v16 = vadd.f32 %v599_v14, %v343_v13  ;;  %v601_v19 = vld [vmem:[%s1834_s7 + $0x388] sm:$0xff]  ;;  %1109 = vst [vmem:[%s1849_s21 + $0x368] sm:$0xff] %v853_v11  ;;  %v856_v20 = vadd.f32 %v600_v17, %v344_v15  ;;  %v346_v22 = vld [vmem:[%s1827_s5 + $0x390] sm:$0xff] }
  0xad   : > { %1110 = vst [vmem:[%s1849_s21 + $0x370] sm:$0xff] %v854_v12  ;;  %v857_v21 = vadd.f32 %v601_v19, %v345_v18  ;;  %v602_v23 = vld [vmem:[%s1834_s7 + $0x390] sm:$0xff]  ;;  %v347_v24 = vld [vmem:[%s1827_s5 + $0x398] sm:$0xff]  ;;  %v348_v27 = vld [vmem:[%s1827_s5 + $0x3a0] sm:$0xff] }
  0xae   : > { %1111 = vst [vmem:[%s1849_s21 + $0x378] sm:$0xff] %v855_v16  ;;  %v858_v25 = vadd.f32 %v602_v23, %v346_v22  ;;  %v603_v26 = vld [vmem:[%s1834_s7 + $0x398] sm:$0xff]  ;;  %v604_v28 = vld [vmem:[%s1834_s7 + $0x3a0] sm:$0xff]  ;;  %1112 = vst [vmem:[%s1849_s21 + $0x380] sm:$0xff] %v856_v20 }
  0xaf   : > { %1113 = vst [vmem:[%s1849_s21 + $0x388] sm:$0xff] %v857_v21  ;;  %v859_v29 = vadd.f32 %v603_v26, %v347_v24  ;;  %v860_v30 = vadd.f32 %v604_v28, %v348_v27  ;;  %v349_v31 = vld [vmem:[%s1827_s5 + $0x3a8] sm:$0xff]  ;;  %v350_v33 = vld [vmem:[%s1827_s5 + $0x3b0] sm:$0xff]  ;;  %v351_v36 = vld [vmem:[%s1827_s5 + $0x3b8] sm:$0xff] }
  0xb0   : > { %v605_v32 = vld [vmem:[%s1834_s7 + $0x3a8] sm:$0xff]  ;;  %1114 = vst [vmem:[%s1849_s21 + $0x390] sm:$0xff] %v858_v25  ;;  %v606_v35 = vld [vmem:[%s1834_s7 + $0x3b0] sm:$0xff]  ;;  %v607_v37 = vld [vmem:[%s1834_s7 + $0x3b8] sm:$0xff] }
  0xb1   : > { %v861_v34 = vadd.f32 %v605_v32, %v349_v31  ;;  %1115 = vst [vmem:[%s1849_s21 + $0x398] sm:$0xff] %v859_v29  ;;  %1116 = vst [vmem:[%s1849_s21 + $0x3a0] sm:$0xff] %v860_v30  ;;  %v862_v38 = vadd.f32 %v606_v35, %v350_v33  ;;  %v863_v39 = vadd.f32 %v607_v37, %v351_v36  ;;  %v352_v40 = vld [vmem:[%s1827_s5 + $0x3c0] sm:$0xff]  ;;  %v353_v42 = vld [vmem:[%s1827_s5 + $0x3c8] sm:$0xff] }
  0xb2   : > { %v608_v41 = vld [vmem:[%s1834_s7 + $0x3c0] sm:$0xff]  ;;  %v609_v44 = vld [vmem:[%s1834_s7 + $0x3c8] sm:$0xff]  ;;  %v354_v45 = vld [vmem:[%s1827_s5 + $0x3d0] sm:$0xff] }
  0xb3   : > { %1117 = vst [vmem:[%s1849_s21 + $0x3a8] sm:$0xff] %v861_v34  ;;  %v864_v43 = vadd.f32 %v608_v41, %v352_v40  ;;  %v610_v46 = vld [vmem:[%s1834_s7 + $0x3d0] sm:$0xff]  ;;  %1118 = vst [vmem:[%s1849_s21 + $0x3b0] sm:$0xff] %v862_v38  ;;  %v865_v47 = vadd.f32 %v609_v44, %v353_v42  ;;  %v355_v49 = vld [vmem:[%s1827_s5 + $0x3d8] sm:$0xff] }
  0xb4   : > { %1119 = vst [vmem:[%s1849_s21 + $0x3b8] sm:$0xff] %v863_v39  ;;  %v866_v48 = vadd.f32 %v610_v46, %v354_v45  ;;  %v611_v50 = vld [vmem:[%s1834_s7 + $0x3d8] sm:$0xff]  ;;  %v356_v51 = vld [vmem:[%s1827_s5 + $0x3e0] sm:$0xff]  ;;  %v357_v54 = vld [vmem:[%s1827_s5 + $0x3e8] sm:$0xff] }
  0xb5   : > { %1120 = vst [vmem:[%s1849_s21 + $0x3c0] sm:$0xff] %v864_v43  ;;  %v867_v52 = vadd.f32 %v611_v50, %v355_v49  ;;  %v612_v53 = vld [vmem:[%s1834_s7 + $0x3e0] sm:$0xff]  ;;  %v613_v55 = vld [vmem:[%s1834_s7 + $0x3e8] sm:$0xff]  ;;  %1121 = vst [vmem:[%s1849_s21 + $0x3c8] sm:$0xff] %v865_v47 }
  0xb6   : > { %1122 = vst [vmem:[%s1849_s21 + $0x3d0] sm:$0xff] %v866_v48  ;;  %v868_v56 = vadd.f32 %v612_v53, %v356_v51  ;;  %v869_v57 = vadd.f32 %v613_v55, %v357_v54  ;;  %v358_v58 = vld [vmem:[%s1827_s5 + $0x3f0] sm:$0xff]  ;;  %v359_v60 = vld [vmem:[%s1827_s5 + $0x3f8] sm:$0xff]  ;;  %v360_v63 = vld [vmem:[%s1827_s5 + $0x400] sm:$0xff] }
  0xb7   : > { %v614_v59 = vld [vmem:[%s1834_s7 + $0x3f0] sm:$0xff]  ;;  %1123 = vst [vmem:[%s1849_s21 + $0x3d8] sm:$0xff] %v867_v52  ;;  %v615_v62 = vld [vmem:[%s1834_s7 + $0x3f8] sm:$0xff]  ;;  %v616_v0 = vld [vmem:[%s1834_s7 + $0x400] sm:$0xff] }
  0xb8   : > { %v870_v61 = vadd.f32 %v614_v59, %v358_v58  ;;  %1124 = vst [vmem:[%s1849_s21 + $0x3e0] sm:$0xff] %v868_v56  ;;  %1125 = vst [vmem:[%s1849_s21 + $0x3e8] sm:$0xff] %v869_v57  ;;  %v871_v1 = vadd.f32 %v615_v62, %v359_v60  ;;  %v872_v2 = vadd.f32 %v616_v0, %v360_v63  ;;  %v361_v3 = vld [vmem:[%s1827_s5 + $0x408] sm:$0xff]  ;;  %v362_v5 = vld [vmem:[%s1827_s5 + $0x410] sm:$0xff] }
  0xb9   : > { %v617_v4 = vld [vmem:[%s1834_s7 + $0x408] sm:$0xff]  ;;  %v618_v7 = vld [vmem:[%s1834_s7 + $0x410] sm:$0xff]  ;;  %v363_v8 = vld [vmem:[%s1827_s5 + $0x418] sm:$0xff] }
  0xba   : > { %1126 = vst [vmem:[%s1849_s21 + $0x3f0] sm:$0xff] %v870_v61  ;;  %v873_v6 = vadd.f32 %v617_v4, %v361_v3  ;;  %v619_v9 = vld [vmem:[%s1834_s7 + $0x418] sm:$0xff]  ;;  %1127 = vst [vmem:[%s1849_s21 + $0x3f8] sm:$0xff] %v871_v1  ;;  %v874_v10 = vadd.f32 %v618_v7, %v362_v5  ;;  %v364_v12 = vld [vmem:[%s1827_s5 + $0x420] sm:$0xff] }
  0xbb   : > { %1128 = vst [vmem:[%s1849_s21 + $0x400] sm:$0xff] %v872_v2  ;;  %v875_v11 = vadd.f32 %v619_v9, %v363_v8  ;;  %v620_v13 = vld [vmem:[%s1834_s7 + $0x420] sm:$0xff]  ;;  %v365_v14 = vld [vmem:[%s1827_s5 + $0x428] sm:$0xff]  ;;  %v366_v17 = vld [vmem:[%s1827_s5 + $0x430] sm:$0xff] }
  0xbc   : > { %1129 = vst [vmem:[%s1849_s21 + $0x408] sm:$0xff] %v873_v6  ;;  %v876_v15 = vadd.f32 %v620_v13, %v364_v12  ;;  %v621_v16 = vld [vmem:[%s1834_s7 + $0x428] sm:$0xff]  ;;  %v622_v18 = vld [vmem:[%s1834_s7 + $0x430] sm:$0xff]  ;;  %1130 = vst [vmem:[%s1849_s21 + $0x410] sm:$0xff] %v874_v10 }
  0xbd   : > { %1131 = vst [vmem:[%s1849_s21 + $0x418] sm:$0xff] %v875_v11  ;;  %v877_v19 = vadd.f32 %v621_v16, %v365_v14  ;;  %v878_v20 = vadd.f32 %v622_v18, %v366_v17  ;;  %v367_v21 = vld [vmem:[%s1827_s5 + $0x438] sm:$0xff]  ;;  %v368_v23 = vld [vmem:[%s1827_s5 + $0x440] sm:$0xff]  ;;  %v369_v26 = vld [vmem:[%s1827_s5 + $0x448] sm:$0xff] }
  0xbe   : > { %v623_v22 = vld [vmem:[%s1834_s7 + $0x438] sm:$0xff]  ;;  %1132 = vst [vmem:[%s1849_s21 + $0x420] sm:$0xff] %v876_v15  ;;  %v624_v25 = vld [vmem:[%s1834_s7 + $0x440] sm:$0xff]  ;;  %v625_v27 = vld [vmem:[%s1834_s7 + $0x448] sm:$0xff] }
  0xbf   : > { %v879_v24 = vadd.f32 %v623_v22, %v367_v21  ;;  %1133 = vst [vmem:[%s1849_s21 + $0x428] sm:$0xff] %v877_v19  ;;  %1134 = vst [vmem:[%s1849_s21 + $0x430] sm:$0xff] %v878_v20  ;;  %v880_v28 = vadd.f32 %v624_v25, %v368_v23  ;;  %v881_v29 = vadd.f32 %v625_v27, %v369_v26  ;;  %v370_v30 = vld [vmem:[%s1827_s5 + $0x450] sm:$0xff]  ;;  %v371_v32 = vld [vmem:[%s1827_s5 + $0x458] sm:$0xff] }
  0xc0   : > { %v626_v31 = vld [vmem:[%s1834_s7 + $0x450] sm:$0xff]  ;;  %v627_v34 = vld [vmem:[%s1834_s7 + $0x458] sm:$0xff]  ;;  %v372_v35 = vld [vmem:[%s1827_s5 + $0x460] sm:$0xff] }
  0xc1   : > { %1135 = vst [vmem:[%s1849_s21 + $0x438] sm:$0xff] %v879_v24  ;;  %v882_v33 = vadd.f32 %v626_v31, %v370_v30  ;;  %v628_v36 = vld [vmem:[%s1834_s7 + $0x460] sm:$0xff]  ;;  %1136 = vst [vmem:[%s1849_s21 + $0x440] sm:$0xff] %v880_v28  ;;  %v883_v37 = vadd.f32 %v627_v34, %v371_v32  ;;  %v373_v39 = vld [vmem:[%s1827_s5 + $0x468] sm:$0xff] }
  0xc2   : > { %1137 = vst [vmem:[%s1849_s21 + $0x448] sm:$0xff] %v881_v29  ;;  %v884_v38 = vadd.f32 %v628_v36, %v372_v35  ;;  %v629_v40 = vld [vmem:[%s1834_s7 + $0x468] sm:$0xff]  ;;  %v374_v41 = vld [vmem:[%s1827_s5 + $0x470] sm:$0xff]  ;;  %v375_v44 = vld [vmem:[%s1827_s5 + $0x478] sm:$0xff] }
  0xc3   : > { %1138 = vst [vmem:[%s1849_s21 + $0x450] sm:$0xff] %v882_v33  ;;  %v885_v42 = vadd.f32 %v629_v40, %v373_v39  ;;  %v630_v43 = vld [vmem:[%s1834_s7 + $0x470] sm:$0xff]  ;;  %v631_v45 = vld [vmem:[%s1834_s7 + $0x478] sm:$0xff]  ;;  %1139 = vst [vmem:[%s1849_s21 + $0x458] sm:$0xff] %v883_v37 }
  0xc4   : > { %1140 = vst [vmem:[%s1849_s21 + $0x460] sm:$0xff] %v884_v38  ;;  %v886_v46 = vadd.f32 %v630_v43, %v374_v41  ;;  %v887_v47 = vadd.f32 %v631_v45, %v375_v44  ;;  %v376_v48 = vld [vmem:[%s1827_s5 + $0x480] sm:$0xff]  ;;  %v377_v50 = vld [vmem:[%s1827_s5 + $0x488] sm:$0xff]  ;;  %v378_v53 = vld [vmem:[%s1827_s5 + $0x490] sm:$0xff] }
  0xc5   : > { %v632_v49 = vld [vmem:[%s1834_s7 + $0x480] sm:$0xff]  ;;  %1141 = vst [vmem:[%s1849_s21 + $0x468] sm:$0xff] %v885_v42  ;;  %v633_v52 = vld [vmem:[%s1834_s7 + $0x488] sm:$0xff]  ;;  %v634_v54 = vld [vmem:[%s1834_s7 + $0x490] sm:$0xff] }
  0xc6   : > { %v888_v51 = vadd.f32 %v632_v49, %v376_v48  ;;  %1142 = vst [vmem:[%s1849_s21 + $0x470] sm:$0xff] %v886_v46  ;;  %1143 = vst [vmem:[%s1849_s21 + $0x478] sm:$0xff] %v887_v47  ;;  %v889_v55 = vadd.f32 %v633_v52, %v377_v50  ;;  %v890_v56 = vadd.f32 %v634_v54, %v378_v53  ;;  %v379_v57 = vld [vmem:[%s1827_s5 + $0x498] sm:$0xff]  ;;  %v380_v59 = vld [vmem:[%s1827_s5 + $0x4a0] sm:$0xff] }
  0xc7   : > { %v635_v58 = vld [vmem:[%s1834_s7 + $0x498] sm:$0xff]  ;;  %v636_v61 = vld [vmem:[%s1834_s7 + $0x4a0] sm:$0xff]  ;;  %v381_v62 = vld [vmem:[%s1827_s5 + $0x4a8] sm:$0xff] }
  0xc8   : > { %1144 = vst [vmem:[%s1849_s21 + $0x480] sm:$0xff] %v888_v51  ;;  %v891_v60 = vadd.f32 %v635_v58, %v379_v57  ;;  %v637_v63 = vld [vmem:[%s1834_s7 + $0x4a8] sm:$0xff]  ;;  %1145 = vst [vmem:[%s1849_s21 + $0x488] sm:$0xff] %v889_v55  ;;  %v892_v0 = vadd.f32 %v636_v61, %v380_v59  ;;  %v382_v2 = vld [vmem:[%s1827_s5 + $0x4b0] sm:$0xff] }
  0xc9   : > { %1146 = vst [vmem:[%s1849_s21 + $0x490] sm:$0xff] %v890_v56  ;;  %v893_v1 = vadd.f32 %v637_v63, %v381_v62  ;;  %v638_v3 = vld [vmem:[%s1834_s7 + $0x4b0] sm:$0xff]  ;;  %v383_v4 = vld [vmem:[%s1827_s5 + $0x4b8] sm:$0xff]  ;;  %v384_v7 = vld [vmem:[%s1827_s5 + $0x4c0] sm:$0xff] }
  0xca   : > { %1147 = vst [vmem:[%s1849_s21 + $0x498] sm:$0xff] %v891_v60  ;;  %v894_v5 = vadd.f32 %v638_v3, %v382_v2  ;;  %v639_v6 = vld [vmem:[%s1834_s7 + $0x4b8] sm:$0xff]  ;;  %v640_v8 = vld [vmem:[%s1834_s7 + $0x4c0] sm:$0xff]  ;;  %1148 = vst [vmem:[%s1849_s21 + $0x4a0] sm:$0xff] %v892_v0 }
  0xcb   : > { %1149 = vst [vmem:[%s1849_s21 + $0x4a8] sm:$0xff] %v893_v1  ;;  %v895_v9 = vadd.f32 %v639_v6, %v383_v4  ;;  %v896_v10 = vadd.f32 %v640_v8, %v384_v7  ;;  %v385_v11 = vld [vmem:[%s1827_s5 + $0x4c8] sm:$0xff]  ;;  %v386_v13 = vld [vmem:[%s1827_s5 + $0x4d0] sm:$0xff]  ;;  %v387_v16 = vld [vmem:[%s1827_s5 + $0x4d8] sm:$0xff] }
  0xcc   : > { %v641_v12 = vld [vmem:[%s1834_s7 + $0x4c8] sm:$0xff]  ;;  %1150 = vst [vmem:[%s1849_s21 + $0x4b0] sm:$0xff] %v894_v5  ;;  %v642_v15 = vld [vmem:[%s1834_s7 + $0x4d0] sm:$0xff]  ;;  %v643_v17 = vld [vmem:[%s1834_s7 + $0x4d8] sm:$0xff] }
  0xcd   : > { %v897_v14 = vadd.f32 %v641_v12, %v385_v11  ;;  %1151 = vst [vmem:[%s1849_s21 + $0x4b8] sm:$0xff] %v895_v9  ;;  %1152 = vst [vmem:[%s1849_s21 + $0x4c0] sm:$0xff] %v896_v10  ;;  %v898_v18 = vadd.f32 %v642_v15, %v386_v13  ;;  %v899_v19 = vadd.f32 %v643_v17, %v387_v16  ;;  %v388_v20 = vld [vmem:[%s1827_s5 + $0x4e0] sm:$0xff]  ;;  %v389_v22 = vld [vmem:[%s1827_s5 + $0x4e8] sm:$0xff] }
  0xce   : > { %v644_v21 = vld [vmem:[%s1834_s7 + $0x4e0] sm:$0xff]  ;;  %v645_v24 = vld [vmem:[%s1834_s7 + $0x4e8] sm:$0xff]  ;;  %v390_v25 = vld [vmem:[%s1827_s5 + $0x4f0] sm:$0xff] }
  0xcf   : > { %1153 = vst [vmem:[%s1849_s21 + $0x4c8] sm:$0xff] %v897_v14  ;;  %v900_v23 = vadd.f32 %v644_v21, %v388_v20  ;;  %v646_v26 = vld [vmem:[%s1834_s7 + $0x4f0] sm:$0xff]  ;;  %1154 = vst [vmem:[%s1849_s21 + $0x4d0] sm:$0xff] %v898_v18  ;;  %v901_v27 = vadd.f32 %v645_v24, %v389_v22  ;;  %v391_v29 = vld [vmem:[%s1827_s5 + $0x4f8] sm:$0xff] }
  0xd0   : > { %1155 = vst [vmem:[%s1849_s21 + $0x4d8] sm:$0xff] %v899_v19  ;;  %v902_v28 = vadd.f32 %v646_v26, %v390_v25  ;;  %v647_v30 = vld [vmem:[%s1834_s7 + $0x4f8] sm:$0xff]  ;;  %v392_v31 = vld [vmem:[%s1827_s5 + $0x500] sm:$0xff]  ;;  %v393_v34 = vld [vmem:[%s1827_s5 + $0x508] sm:$0xff] }
  0xd1   : > { %1156 = vst [vmem:[%s1849_s21 + $0x4e0] sm:$0xff] %v900_v23  ;;  %v903_v32 = vadd.f32 %v647_v30, %v391_v29  ;;  %v648_v33 = vld [vmem:[%s1834_s7 + $0x500] sm:$0xff]  ;;  %v649_v35 = vld [vmem:[%s1834_s7 + $0x508] sm:$0xff]  ;;  %1157 = vst [vmem:[%s1849_s21 + $0x4e8] sm:$0xff] %v901_v27 }
  0xd2   : > { %1158 = vst [vmem:[%s1849_s21 + $0x4f0] sm:$0xff] %v902_v28  ;;  %v904_v36 = vadd.f32 %v648_v33, %v392_v31  ;;  %v905_v37 = vadd.f32 %v649_v35, %v393_v34  ;;  %v394_v38 = vld [vmem:[%s1827_s5 + $0x510] sm:$0xff]  ;;  %v395_v40 = vld [vmem:[%s1827_s5 + $0x518] sm:$0xff]  ;;  %v396_v43 = vld [vmem:[%s1827_s5 + $0x520] sm:$0xff] }
  0xd3   : > { %v650_v39 = vld [vmem:[%s1834_s7 + $0x510] sm:$0xff]  ;;  %1159 = vst [vmem:[%s1849_s21 + $0x4f8] sm:$0xff] %v903_v32  ;;  %v651_v42 = vld [vmem:[%s1834_s7 + $0x518] sm:$0xff]  ;;  %v652_v44 = vld [vmem:[%s1834_s7 + $0x520] sm:$0xff] }
  0xd4   : > { %v906_v41 = vadd.f32 %v650_v39, %v394_v38  ;;  %1160 = vst [vmem:[%s1849_s21 + $0x500] sm:$0xff] %v904_v36  ;;  %1161 = vst [vmem:[%s1849_s21 + $0x508] sm:$0xff] %v905_v37  ;;  %v907_v45 = vadd.f32 %v651_v42, %v395_v40  ;;  %v908_v46 = vadd.f32 %v652_v44, %v396_v43  ;;  %v397_v47 = vld [vmem:[%s1827_s5 + $0x528] sm:$0xff]  ;;  %v398_v49 = vld [vmem:[%s1827_s5 + $0x530] sm:$0xff] }
  0xd5   : > { %v653_v48 = vld [vmem:[%s1834_s7 + $0x528] sm:$0xff]  ;;  %v654_v51 = vld [vmem:[%s1834_s7 + $0x530] sm:$0xff]  ;;  %v399_v52 = vld [vmem:[%s1827_s5 + $0x538] sm:$0xff] }
  0xd6   : > { %1162 = vst [vmem:[%s1849_s21 + $0x510] sm:$0xff] %v906_v41  ;;  %v909_v50 = vadd.f32 %v653_v48, %v397_v47  ;;  %v655_v53 = vld [vmem:[%s1834_s7 + $0x538] sm:$0xff]  ;;  %1163 = vst [vmem:[%s1849_s21 + $0x518] sm:$0xff] %v907_v45  ;;  %v910_v54 = vadd.f32 %v654_v51, %v398_v49  ;;  %v400_v56 = vld [vmem:[%s1827_s5 + $0x540] sm:$0xff] }
  0xd7   : > { %1164 = vst [vmem:[%s1849_s21 + $0x520] sm:$0xff] %v908_v46  ;;  %v911_v55 = vadd.f32 %v655_v53, %v399_v52  ;;  %v656_v57 = vld [vmem:[%s1834_s7 + $0x540] sm:$0xff]  ;;  %v401_v58 = vld [vmem:[%s1827_s5 + $0x548] sm:$0xff]  ;;  %v402_v61 = vld [vmem:[%s1827_s5 + $0x550] sm:$0xff] }
  0xd8   : > { %1165 = vst [vmem:[%s1849_s21 + $0x528] sm:$0xff] %v909_v50  ;;  %v912_v59 = vadd.f32 %v656_v57, %v400_v56  ;;  %v657_v60 = vld [vmem:[%s1834_s7 + $0x548] sm:$0xff]  ;;  %v658_v62 = vld [vmem:[%s1834_s7 + $0x550] sm:$0xff]  ;;  %1166 = vst [vmem:[%s1849_s21 + $0x530] sm:$0xff] %v910_v54 }
  0xd9   : > { %1167 = vst [vmem:[%s1849_s21 + $0x538] sm:$0xff] %v911_v55  ;;  %v913_v63 = vadd.f32 %v657_v60, %v401_v58  ;;  %v914_v0 = vadd.f32 %v658_v62, %v402_v61  ;;  %v403_v1 = vld [vmem:[%s1827_s5 + $0x558] sm:$0xff]  ;;  %v404_v3 = vld [vmem:[%s1827_s5 + $0x560] sm:$0xff]  ;;  %v405_v6 = vld [vmem:[%s1827_s5 + $0x568] sm:$0xff] }
  0xda   : > { %v659_v2 = vld [vmem:[%s1834_s7 + $0x558] sm:$0xff]  ;;  %1168 = vst [vmem:[%s1849_s21 + $0x540] sm:$0xff] %v912_v59  ;;  %v660_v5 = vld [vmem:[%s1834_s7 + $0x560] sm:$0xff]  ;;  %v661_v7 = vld [vmem:[%s1834_s7 + $0x568] sm:$0xff] }
  0xdb   : > { %v915_v4 = vadd.f32 %v659_v2, %v403_v1  ;;  %1169 = vst [vmem:[%s1849_s21 + $0x548] sm:$0xff] %v913_v63  ;;  %1170 = vst [vmem:[%s1849_s21 + $0x550] sm:$0xff] %v914_v0  ;;  %v916_v8 = vadd.f32 %v660_v5, %v404_v3  ;;  %v917_v9 = vadd.f32 %v661_v7, %v405_v6  ;;  %v406_v10 = vld [vmem:[%s1827_s5 + $0x570] sm:$0xff]  ;;  %v407_v12 = vld [vmem:[%s1827_s5 + $0x578] sm:$0xff] }
  0xdc   : > { %v662_v11 = vld [vmem:[%s1834_s7 + $0x570] sm:$0xff]  ;;  %v663_v14 = vld [vmem:[%s1834_s7 + $0x578] sm:$0xff]  ;;  %v408_v15 = vld [vmem:[%s1827_s5 + $0x580] sm:$0xff] }
  0xdd   : > { %1171 = vst [vmem:[%s1849_s21 + $0x558] sm:$0xff] %v915_v4  ;;  %v918_v13 = vadd.f32 %v662_v11, %v406_v10  ;;  %v664_v16 = vld [vmem:[%s1834_s7 + $0x580] sm:$0xff]  ;;  %1172 = vst [vmem:[%s1849_s21 + $0x560] sm:$0xff] %v916_v8  ;;  %v919_v17 = vadd.f32 %v663_v14, %v407_v12  ;;  %v409_v19 = vld [vmem:[%s1827_s5 + $0x588] sm:$0xff] }
  0xde   : > { %1173 = vst [vmem:[%s1849_s21 + $0x568] sm:$0xff] %v917_v9  ;;  %v920_v18 = vadd.f32 %v664_v16, %v408_v15  ;;  %v665_v20 = vld [vmem:[%s1834_s7 + $0x588] sm:$0xff]  ;;  %v410_v21 = vld [vmem:[%s1827_s5 + $0x590] sm:$0xff]  ;;  %v411_v24 = vld [vmem:[%s1827_s5 + $0x598] sm:$0xff] }
  0xdf   : > { %1174 = vst [vmem:[%s1849_s21 + $0x570] sm:$0xff] %v918_v13  ;;  %v921_v22 = vadd.f32 %v665_v20, %v409_v19  ;;  %v666_v23 = vld [vmem:[%s1834_s7 + $0x590] sm:$0xff]  ;;  %v667_v25 = vld [vmem:[%s1834_s7 + $0x598] sm:$0xff]  ;;  %1175 = vst [vmem:[%s1849_s21 + $0x578] sm:$0xff] %v919_v17 }
  0xe0   : > { %1176 = vst [vmem:[%s1849_s21 + $0x580] sm:$0xff] %v920_v18  ;;  %v922_v26 = vadd.f32 %v666_v23, %v410_v21  ;;  %v923_v27 = vadd.f32 %v667_v25, %v411_v24  ;;  %v412_v28 = vld [vmem:[%s1827_s5 + $0x5a0] sm:$0xff]  ;;  %v413_v30 = vld [vmem:[%s1827_s5 + $0x5a8] sm:$0xff]  ;;  %v414_v33 = vld [vmem:[%s1827_s5 + $0x5b0] sm:$0xff] }
  0xe1   : > { %v668_v29 = vld [vmem:[%s1834_s7 + $0x5a0] sm:$0xff]  ;;  %1177 = vst [vmem:[%s1849_s21 + $0x588] sm:$0xff] %v921_v22  ;;  %v669_v32 = vld [vmem:[%s1834_s7 + $0x5a8] sm:$0xff]  ;;  %v670_v34 = vld [vmem:[%s1834_s7 + $0x5b0] sm:$0xff] }
  0xe2   : > { %v924_v31 = vadd.f32 %v668_v29, %v412_v28  ;;  %1178 = vst [vmem:[%s1849_s21 + $0x590] sm:$0xff] %v922_v26  ;;  %1179 = vst [vmem:[%s1849_s21 + $0x598] sm:$0xff] %v923_v27  ;;  %v925_v35 = vadd.f32 %v669_v32, %v413_v30  ;;  %v926_v36 = vadd.f32 %v670_v34, %v414_v33  ;;  %v415_v37 = vld [vmem:[%s1827_s5 + $0x5b8] sm:$0xff]  ;;  %v416_v39 = vld [vmem:[%s1827_s5 + $0x5c0] sm:$0xff] }
  0xe3   : > { %v671_v38 = vld [vmem:[%s1834_s7 + $0x5b8] sm:$0xff]  ;;  %v672_v41 = vld [vmem:[%s1834_s7 + $0x5c0] sm:$0xff]  ;;  %v417_v42 = vld [vmem:[%s1827_s5 + $0x5c8] sm:$0xff] }
  0xe4   : > { %1180 = vst [vmem:[%s1849_s21 + $0x5a0] sm:$0xff] %v924_v31  ;;  %v927_v40 = vadd.f32 %v671_v38, %v415_v37  ;;  %v673_v43 = vld [vmem:[%s1834_s7 + $0x5c8] sm:$0xff]  ;;  %1181 = vst [vmem:[%s1849_s21 + $0x5a8] sm:$0xff] %v925_v35  ;;  %v928_v44 = vadd.f32 %v672_v41, %v416_v39  ;;  %v418_v46 = vld [vmem:[%s1827_s5 + $0x5d0] sm:$0xff] }
  0xe5   : > { %1182 = vst [vmem:[%s1849_s21 + $0x5b0] sm:$0xff] %v926_v36  ;;  %v929_v45 = vadd.f32 %v673_v43, %v417_v42  ;;  %v674_v47 = vld [vmem:[%s1834_s7 + $0x5d0] sm:$0xff]  ;;  %v419_v48 = vld [vmem:[%s1827_s5 + $0x5d8] sm:$0xff]  ;;  %v420_v51 = vld [vmem:[%s1827_s5 + $0x5e0] sm:$0xff] }
  0xe6   : > { %1183 = vst [vmem:[%s1849_s21 + $0x5b8] sm:$0xff] %v927_v40  ;;  %v930_v49 = vadd.f32 %v674_v47, %v418_v46  ;;  %v675_v50 = vld [vmem:[%s1834_s7 + $0x5d8] sm:$0xff]  ;;  %v676_v52 = vld [vmem:[%s1834_s7 + $0x5e0] sm:$0xff]  ;;  %1184 = vst [vmem:[%s1849_s21 + $0x5c0] sm:$0xff] %v928_v44 }
  0xe7   : > { %1185 = vst [vmem:[%s1849_s21 + $0x5c8] sm:$0xff] %v929_v45  ;;  %v931_v53 = vadd.f32 %v675_v50, %v419_v48  ;;  %v932_v54 = vadd.f32 %v676_v52, %v420_v51  ;;  %v421_v55 = vld [vmem:[%s1827_s5 + $0x5e8] sm:$0xff]  ;;  %v422_v57 = vld [vmem:[%s1827_s5 + $0x5f0] sm:$0xff]  ;;  %v423_v60 = vld [vmem:[%s1827_s5 + $0x5f8] sm:$0xff] }
  0xe8   : > { %v677_v56 = vld [vmem:[%s1834_s7 + $0x5e8] sm:$0xff]  ;;  %1186 = vst [vmem:[%s1849_s21 + $0x5d0] sm:$0xff] %v930_v49  ;;  %v678_v59 = vld [vmem:[%s1834_s7 + $0x5f0] sm:$0xff]  ;;  %v679_v61 = vld [vmem:[%s1834_s7 + $0x5f8] sm:$0xff] }
  0xe9   : > { %v933_v58 = vadd.f32 %v677_v56, %v421_v55  ;;  %1187 = vst [vmem:[%s1849_s21 + $0x5d8] sm:$0xff] %v931_v53  ;;  %1188 = vst [vmem:[%s1849_s21 + $0x5e0] sm:$0xff] %v932_v54  ;;  %v934_v62 = vadd.f32 %v678_v59, %v422_v57  ;;  %v935_v63 = vadd.f32 %v679_v61, %v423_v60  ;;  %v424_v0 = vld [vmem:[%s1827_s5 + $0x600] sm:$0xff]  ;;  %v425_v2 = vld [vmem:[%s1827_s5 + $0x608] sm:$0xff] }
  0xea   : > { %v680_v1 = vld [vmem:[%s1834_s7 + $0x600] sm:$0xff]  ;;  %v681_v4 = vld [vmem:[%s1834_s7 + $0x608] sm:$0xff]  ;;  %v426_v5 = vld [vmem:[%s1827_s5 + $0x610] sm:$0xff] }
  0xeb   : > { %1189 = vst [vmem:[%s1849_s21 + $0x5e8] sm:$0xff] %v933_v58  ;;  %v936_v3 = vadd.f32 %v680_v1, %v424_v0  ;;  %v682_v6 = vld [vmem:[%s1834_s7 + $0x610] sm:$0xff]  ;;  %1190 = vst [vmem:[%s1849_s21 + $0x5f0] sm:$0xff] %v934_v62  ;;  %v937_v7 = vadd.f32 %v681_v4, %v425_v2  ;;  %v427_v9 = vld [vmem:[%s1827_s5 + $0x618] sm:$0xff] }
  0xec   : > { %1191 = vst [vmem:[%s1849_s21 + $0x5f8] sm:$0xff] %v935_v63  ;;  %v938_v8 = vadd.f32 %v682_v6, %v426_v5  ;;  %v683_v10 = vld [vmem:[%s1834_s7 + $0x618] sm:$0xff]  ;;  %v428_v11 = vld [vmem:[%s1827_s5 + $0x620] sm:$0xff]  ;;  %v429_v14 = vld [vmem:[%s1827_s5 + $0x628] sm:$0xff] }
  0xed   : > { %1192 = vst [vmem:[%s1849_s21 + $0x600] sm:$0xff] %v936_v3  ;;  %v939_v12 = vadd.f32 %v683_v10, %v427_v9  ;;  %v684_v13 = vld [vmem:[%s1834_s7 + $0x620] sm:$0xff]  ;;  %v685_v15 = vld [vmem:[%s1834_s7 + $0x628] sm:$0xff]  ;;  %1193 = vst [vmem:[%s1849_s21 + $0x608] sm:$0xff] %v937_v7 }
  0xee   : > { %1194 = vst [vmem:[%s1849_s21 + $0x610] sm:$0xff] %v938_v8  ;;  %v940_v16 = vadd.f32 %v684_v13, %v428_v11  ;;  %v941_v17 = vadd.f32 %v685_v15, %v429_v14  ;;  %v430_v18 = vld [vmem:[%s1827_s5 + $0x630] sm:$0xff]  ;;  %v431_v20 = vld [vmem:[%s1827_s5 + $0x638] sm:$0xff]  ;;  %v432_v23 = vld [vmem:[%s1827_s5 + $0x640] sm:$0xff] }
  0xef   : > { %v686_v19 = vld [vmem:[%s1834_s7 + $0x630] sm:$0xff]  ;;  %1195 = vst [vmem:[%s1849_s21 + $0x618] sm:$0xff] %v939_v12  ;;  %v687_v22 = vld [vmem:[%s1834_s7 + $0x638] sm:$0xff]  ;;  %v688_v24 = vld [vmem:[%s1834_s7 + $0x640] sm:$0xff] }
  0xf0   : > { %v942_v21 = vadd.f32 %v686_v19, %v430_v18  ;;  %1196 = vst [vmem:[%s1849_s21 + $0x620] sm:$0xff] %v940_v16  ;;  %1197 = vst [vmem:[%s1849_s21 + $0x628] sm:$0xff] %v941_v17  ;;  %v943_v25 = vadd.f32 %v687_v22, %v431_v20  ;;  %v944_v26 = vadd.f32 %v688_v24, %v432_v23  ;;  %v433_v27 = vld [vmem:[%s1827_s5 + $0x648] sm:$0xff]  ;;  %v434_v29 = vld [vmem:[%s1827_s5 + $0x650] sm:$0xff] }
  0xf1   : > { %v689_v28 = vld [vmem:[%s1834_s7 + $0x648] sm:$0xff]  ;;  %v690_v31 = vld [vmem:[%s1834_s7 + $0x650] sm:$0xff]  ;;  %v435_v32 = vld [vmem:[%s1827_s5 + $0x658] sm:$0xff] }
  0xf2   : > { %1198 = vst [vmem:[%s1849_s21 + $0x630] sm:$0xff] %v942_v21  ;;  %v945_v30 = vadd.f32 %v689_v28, %v433_v27  ;;  %v691_v33 = vld [vmem:[%s1834_s7 + $0x658] sm:$0xff]  ;;  %1199 = vst [vmem:[%s1849_s21 + $0x638] sm:$0xff] %v943_v25  ;;  %v946_v34 = vadd.f32 %v690_v31, %v434_v29  ;;  %v436_v36 = vld [vmem:[%s1827_s5 + $0x660] sm:$0xff] }
  0xf3   : > { %1200 = vst [vmem:[%s1849_s21 + $0x640] sm:$0xff] %v944_v26  ;;  %v947_v35 = vadd.f32 %v691_v33, %v435_v32  ;;  %v692_v37 = vld [vmem:[%s1834_s7 + $0x660] sm:$0xff]  ;;  %v437_v38 = vld [vmem:[%s1827_s5 + $0x668] sm:$0xff]  ;;  %v438_v41 = vld [vmem:[%s1827_s5 + $0x670] sm:$0xff] }
  0xf4   : > { %1201 = vst [vmem:[%s1849_s21 + $0x648] sm:$0xff] %v945_v30  ;;  %v948_v39 = vadd.f32 %v692_v37, %v436_v36  ;;  %v693_v40 = vld [vmem:[%s1834_s7 + $0x668] sm:$0xff]  ;;  %v694_v42 = vld [vmem:[%s1834_s7 + $0x670] sm:$0xff]  ;;  %1202 = vst [vmem:[%s1849_s21 + $0x650] sm:$0xff] %v946_v34 }
  0xf5   : > { %1203 = vst [vmem:[%s1849_s21 + $0x658] sm:$0xff] %v947_v35  ;;  %v949_v43 = vadd.f32 %v693_v40, %v437_v38  ;;  %v950_v44 = vadd.f32 %v694_v42, %v438_v41  ;;  %v439_v45 = vld [vmem:[%s1827_s5 + $0x678] sm:$0xff]  ;;  %v440_v47 = vld [vmem:[%s1827_s5 + $0x680] sm:$0xff]  ;;  %v441_v50 = vld [vmem:[%s1827_s5 + $0x688] sm:$0xff] }
  0xf6   : > { %v695_v46 = vld [vmem:[%s1834_s7 + $0x678] sm:$0xff]  ;;  %1204 = vst [vmem:[%s1849_s21 + $0x660] sm:$0xff] %v948_v39  ;;  %v696_v49 = vld [vmem:[%s1834_s7 + $0x680] sm:$0xff]  ;;  %v697_v51 = vld [vmem:[%s1834_s7 + $0x688] sm:$0xff] }
  0xf7   : > { %v951_v48 = vadd.f32 %v695_v46, %v439_v45  ;;  %1205 = vst [vmem:[%s1849_s21 + $0x668] sm:$0xff] %v949_v43  ;;  %1206 = vst [vmem:[%s1849_s21 + $0x670] sm:$0xff] %v950_v44  ;;  %v952_v52 = vadd.f32 %v696_v49, %v440_v47  ;;  %v953_v53 = vadd.f32 %v697_v51, %v441_v50  ;;  %v442_v54 = vld [vmem:[%s1827_s5 + $0x690] sm:$0xff]  ;;  %v443_v56 = vld [vmem:[%s1827_s5 + $0x698] sm:$0xff] }
  0xf8   : > { %v698_v55 = vld [vmem:[%s1834_s7 + $0x690] sm:$0xff]  ;;  %v699_v58 = vld [vmem:[%s1834_s7 + $0x698] sm:$0xff]  ;;  %v444_v59 = vld [vmem:[%s1827_s5 + $0x6a0] sm:$0xff] }
  0xf9   : > { %1207 = vst [vmem:[%s1849_s21 + $0x678] sm:$0xff] %v951_v48  ;;  %v954_v57 = vadd.f32 %v698_v55, %v442_v54  ;;  %v700_v60 = vld [vmem:[%s1834_s7 + $0x6a0] sm:$0xff]  ;;  %1208 = vst [vmem:[%s1849_s21 + $0x680] sm:$0xff] %v952_v52  ;;  %v955_v61 = vadd.f32 %v699_v58, %v443_v56  ;;  %v445_v63 = vld [vmem:[%s1827_s5 + $0x6a8] sm:$0xff] }
  0xfa   : > { %1209 = vst [vmem:[%s1849_s21 + $0x688] sm:$0xff] %v953_v53  ;;  %v956_v62 = vadd.f32 %v700_v60, %v444_v59  ;;  %v701_v0 = vld [vmem:[%s1834_s7 + $0x6a8] sm:$0xff]  ;;  %v446_v1 = vld [vmem:[%s1827_s5 + $0x6b0] sm:$0xff]  ;;  %v447_v4 = vld [vmem:[%s1827_s5 + $0x6b8] sm:$0xff] }
  0xfb   : > { %1210 = vst [vmem:[%s1849_s21 + $0x690] sm:$0xff] %v954_v57  ;;  %v957_v2 = vadd.f32 %v701_v0, %v445_v63  ;;  %v702_v3 = vld [vmem:[%s1834_s7 + $0x6b0] sm:$0xff]  ;;  %v703_v5 = vld [vmem:[%s1834_s7 + $0x6b8] sm:$0xff]  ;;  %1211 = vst [vmem:[%s1849_s21 + $0x698] sm:$0xff] %v955_v61 }
  0xfc   : > { %1212 = vst [vmem:[%s1849_s21 + $0x6a0] sm:$0xff] %v956_v62  ;;  %v958_v6 = vadd.f32 %v702_v3, %v446_v1  ;;  %v959_v7 = vadd.f32 %v703_v5, %v447_v4  ;;  %v448_v8 = vld [vmem:[%s1827_s5 + $0x6c0] sm:$0xff]  ;;  %v449_v10 = vld [vmem:[%s1827_s5 + $0x6c8] sm:$0xff]  ;;  %v450_v13 = vld [vmem:[%s1827_s5 + $0x6d0] sm:$0xff] }
  0xfd   : > { %v704_v9 = vld [vmem:[%s1834_s7 + $0x6c0] sm:$0xff]  ;;  %1213 = vst [vmem:[%s1849_s21 + $0x6a8] sm:$0xff] %v957_v2  ;;  %v705_v12 = vld [vmem:[%s1834_s7 + $0x6c8] sm:$0xff]  ;;  %v706_v14 = vld [vmem:[%s1834_s7 + $0x6d0] sm:$0xff] }
  0xfe   : > { %v960_v11 = vadd.f32 %v704_v9, %v448_v8  ;;  %1214 = vst [vmem:[%s1849_s21 + $0x6b0] sm:$0xff] %v958_v6  ;;  %1215 = vst [vmem:[%s1849_s21 + $0x6b8] sm:$0xff] %v959_v7  ;;  %v961_v15 = vadd.f32 %v705_v12, %v449_v10  ;;  %v962_v16 = vadd.f32 %v706_v14, %v450_v13  ;;  %v451_v17 = vld [vmem:[%s1827_s5 + $0x6d8] sm:$0xff]  ;;  %v452_v19 = vld [vmem:[%s1827_s5 + $0x6e0] sm:$0xff] }
  0xff   : > { %v707_v18 = vld [vmem:[%s1834_s7 + $0x6d8] sm:$0xff]  ;;  %v708_v21 = vld [vmem:[%s1834_s7 + $0x6e0] sm:$0xff]  ;;  %v453_v22 = vld [vmem:[%s1827_s5 + $0x6e8] sm:$0xff] }
 0x100   : > { %1216 = vst [vmem:[%s1849_s21 + $0x6c0] sm:$0xff] %v960_v11  ;;  %v963_v20 = vadd.f32 %v707_v18, %v451_v17  ;;  %v709_v23 = vld [vmem:[%s1834_s7 + $0x6e8] sm:$0xff]  ;;  %1217 = vst [vmem:[%s1849_s21 + $0x6c8] sm:$0xff] %v961_v15  ;;  %v964_v24 = vadd.f32 %v708_v21, %v452_v19  ;;  %v454_v26 = vld [vmem:[%s1827_s5 + $0x6f0] sm:$0xff] }
 0x101   : > { %1218 = vst [vmem:[%s1849_s21 + $0x6d0] sm:$0xff] %v962_v16  ;;  %v965_v25 = vadd.f32 %v709_v23, %v453_v22  ;;  %v710_v27 = vld [vmem:[%s1834_s7 + $0x6f0] sm:$0xff]  ;;  %v455_v28 = vld [vmem:[%s1827_s5 + $0x6f8] sm:$0xff]  ;;  %v456_v31 = vld [vmem:[%s1827_s5 + $0x700] sm:$0xff] }
 0x102   : > { %1219 = vst [vmem:[%s1849_s21 + $0x6d8] sm:$0xff] %v963_v20  ;;  %v966_v29 = vadd.f32 %v710_v27, %v454_v26  ;;  %v711_v30 = vld [vmem:[%s1834_s7 + $0x6f8] sm:$0xff]  ;;  %v712_v32 = vld [vmem:[%s1834_s7 + $0x700] sm:$0xff]  ;;  %1220 = vst [vmem:[%s1849_s21 + $0x6e0] sm:$0xff] %v964_v24 }
 0x103   : > { %1221 = vst [vmem:[%s1849_s21 + $0x6e8] sm:$0xff] %v965_v25  ;;  %v967_v33 = vadd.f32 %v711_v30, %v455_v28  ;;  %v968_v34 = vadd.f32 %v712_v32, %v456_v31  ;;  %v457_v35 = vld [vmem:[%s1827_s5 + $0x708] sm:$0xff]  ;;  %v458_v37 = vld [vmem:[%s1827_s5 + $0x710] sm:$0xff]  ;;  %v459_v40 = vld [vmem:[%s1827_s5 + $0x718] sm:$0xff] }
 0x104   : > { %v713_v36 = vld [vmem:[%s1834_s7 + $0x708] sm:$0xff]  ;;  %1222 = vst [vmem:[%s1849_s21 + $0x6f0] sm:$0xff] %v966_v29  ;;  %v714_v39 = vld [vmem:[%s1834_s7 + $0x710] sm:$0xff]  ;;  %v715_v41 = vld [vmem:[%s1834_s7 + $0x718] sm:$0xff] }
 0x105   : > { %v969_v38 = vadd.f32 %v713_v36, %v457_v35  ;;  %1223 = vst [vmem:[%s1849_s21 + $0x6f8] sm:$0xff] %v967_v33  ;;  %1224 = vst [vmem:[%s1849_s21 + $0x700] sm:$0xff] %v968_v34  ;;  %v970_v42 = vadd.f32 %v714_v39, %v458_v37  ;;  %v971_v43 = vadd.f32 %v715_v41, %v459_v40  ;;  %v460_v44 = vld [vmem:[%s1827_s5 + $0x720] sm:$0xff]  ;;  %v461_v46 = vld [vmem:[%s1827_s5 + $0x728] sm:$0xff] }
 0x106   : > { %v716_v45 = vld [vmem:[%s1834_s7 + $0x720] sm:$0xff]  ;;  %v717_v48 = vld [vmem:[%s1834_s7 + $0x728] sm:$0xff]  ;;  %v462_v49 = vld [vmem:[%s1827_s5 + $0x730] sm:$0xff] }
 0x107   : > { %1225 = vst [vmem:[%s1849_s21 + $0x708] sm:$0xff] %v969_v38  ;;  %v972_v47 = vadd.f32 %v716_v45, %v460_v44  ;;  %v718_v50 = vld [vmem:[%s1834_s7 + $0x730] sm:$0xff]  ;;  %1226 = vst [vmem:[%s1849_s21 + $0x710] sm:$0xff] %v970_v42  ;;  %v973_v51 = vadd.f32 %v717_v48, %v461_v46  ;;  %v463_v53 = vld [vmem:[%s1827_s5 + $0x738] sm:$0xff] }
 0x108   : > { %1227 = vst [vmem:[%s1849_s21 + $0x718] sm:$0xff] %v971_v43  ;;  %v974_v52 = vadd.f32 %v718_v50, %v462_v49  ;;  %v719_v54 = vld [vmem:[%s1834_s7 + $0x738] sm:$0xff]  ;;  %v464_v55 = vld [vmem:[%s1827_s5 + $0x740] sm:$0xff]  ;;  %v465_v58 = vld [vmem:[%s1827_s5 + $0x748] sm:$0xff] }
 0x109   : > { %1228 = vst [vmem:[%s1849_s21 + $0x720] sm:$0xff] %v972_v47  ;;  %v975_v56 = vadd.f32 %v719_v54, %v463_v53  ;;  %v720_v57 = vld [vmem:[%s1834_s7 + $0x740] sm:$0xff]  ;;  %v721_v59 = vld [vmem:[%s1834_s7 + $0x748] sm:$0xff]  ;;  %1229 = vst [vmem:[%s1849_s21 + $0x728] sm:$0xff] %v973_v51 }
 0x10a   : > { %1230 = vst [vmem:[%s1849_s21 + $0x730] sm:$0xff] %v974_v52  ;;  %v976_v60 = vadd.f32 %v720_v57, %v464_v55  ;;  %v977_v61 = vadd.f32 %v721_v59, %v465_v58  ;;  %v466_v62 = vld [vmem:[%s1827_s5 + $0x750] sm:$0xff]  ;;  %v467_v0 = vld [vmem:[%s1827_s5 + $0x758] sm:$0xff]  ;;  %v468_v3 = vld [vmem:[%s1827_s5 + $0x760] sm:$0xff] }
 0x10b   : > { %v722_v63 = vld [vmem:[%s1834_s7 + $0x750] sm:$0xff]  ;;  %1231 = vst [vmem:[%s1849_s21 + $0x738] sm:$0xff] %v975_v56  ;;  %v723_v2 = vld [vmem:[%s1834_s7 + $0x758] sm:$0xff]  ;;  %v724_v4 = vld [vmem:[%s1834_s7 + $0x760] sm:$0xff] }
 0x10c   : > { %v978_v1 = vadd.f32 %v722_v63, %v466_v62  ;;  %1232 = vst [vmem:[%s1849_s21 + $0x740] sm:$0xff] %v976_v60  ;;  %1233 = vst [vmem:[%s1849_s21 + $0x748] sm:$0xff] %v977_v61  ;;  %v979_v5 = vadd.f32 %v723_v2, %v467_v0  ;;  %v980_v6 = vadd.f32 %v724_v4, %v468_v3  ;;  %v469_v7 = vld [vmem:[%s1827_s5 + $0x768] sm:$0xff]  ;;  %v470_v9 = vld [vmem:[%s1827_s5 + $0x770] sm:$0xff] }
 0x10d   : > { %v725_v8 = vld [vmem:[%s1834_s7 + $0x768] sm:$0xff]  ;;  %v726_v11 = vld [vmem:[%s1834_s7 + $0x770] sm:$0xff]  ;;  %v471_v12 = vld [vmem:[%s1827_s5 + $0x778] sm:$0xff] }
 0x10e   : > { %1234 = vst [vmem:[%s1849_s21 + $0x750] sm:$0xff] %v978_v1  ;;  %v981_v10 = vadd.f32 %v725_v8, %v469_v7  ;;  %v727_v13 = vld [vmem:[%s1834_s7 + $0x778] sm:$0xff]  ;;  %1235 = vst [vmem:[%s1849_s21 + $0x758] sm:$0xff] %v979_v5  ;;  %v982_v14 = vadd.f32 %v726_v11, %v470_v9  ;;  %v472_v16 = vld [vmem:[%s1827_s5 + $0x780] sm:$0xff] }
 0x10f   : > { %1236 = vst [vmem:[%s1849_s21 + $0x760] sm:$0xff] %v980_v6  ;;  %v983_v15 = vadd.f32 %v727_v13, %v471_v12  ;;  %v728_v17 = vld [vmem:[%s1834_s7 + $0x780] sm:$0xff]  ;;  %v473_v18 = vld [vmem:[%s1827_s5 + $0x788] sm:$0xff]  ;;  %v474_v21 = vld [vmem:[%s1827_s5 + $0x790] sm:$0xff] }
 0x110   : > { %1237 = vst [vmem:[%s1849_s21 + $0x768] sm:$0xff] %v981_v10  ;;  %v984_v19 = vadd.f32 %v728_v17, %v472_v16  ;;  %v729_v20 = vld [vmem:[%s1834_s7 + $0x788] sm:$0xff]  ;;  %v730_v22 = vld [vmem:[%s1834_s7 + $0x790] sm:$0xff]  ;;  %1238 = vst [vmem:[%s1849_s21 + $0x770] sm:$0xff] %v982_v14 }
 0x111   : > { %1239 = vst [vmem:[%s1849_s21 + $0x778] sm:$0xff] %v983_v15  ;;  %v985_v23 = vadd.f32 %v729_v20, %v473_v18  ;;  %v986_v24 = vadd.f32 %v730_v22, %v474_v21  ;;  %v475_v25 = vld [vmem:[%s1827_s5 + $0x798] sm:$0xff]  ;;  %v476_v27 = vld [vmem:[%s1827_s5 + $0x7a0] sm:$0xff]  ;;  %v477_v30 = vld [vmem:[%s1827_s5 + $0x7a8] sm:$0xff] }
 0x112   : > { %v731_v26 = vld [vmem:[%s1834_s7 + $0x798] sm:$0xff]  ;;  %1240 = vst [vmem:[%s1849_s21 + $0x780] sm:$0xff] %v984_v19  ;;  %v732_v29 = vld [vmem:[%s1834_s7 + $0x7a0] sm:$0xff]  ;;  %v733_v31 = vld [vmem:[%s1834_s7 + $0x7a8] sm:$0xff] }
 0x113   : > { %v987_v28 = vadd.f32 %v731_v26, %v475_v25  ;;  %1241 = vst [vmem:[%s1849_s21 + $0x788] sm:$0xff] %v985_v23  ;;  %1242 = vst [vmem:[%s1849_s21 + $0x790] sm:$0xff] %v986_v24  ;;  %v988_v32 = vadd.f32 %v732_v29, %v476_v27  ;;  %v989_v33 = vadd.f32 %v733_v31, %v477_v30  ;;  %v478_v34 = vld [vmem:[%s1827_s5 + $0x7b0] sm:$0xff]  ;;  %v479_v36 = vld [vmem:[%s1827_s5 + $0x7b8] sm:$0xff] }
 0x114   : > { %v734_v35 = vld [vmem:[%s1834_s7 + $0x7b0] sm:$0xff]  ;;  %v735_v38 = vld [vmem:[%s1834_s7 + $0x7b8] sm:$0xff]  ;;  %v480_v39 = vld [vmem:[%s1827_s5 + $0x7c0] sm:$0xff] }
 0x115   : > { %1243 = vst [vmem:[%s1849_s21 + $0x798] sm:$0xff] %v987_v28  ;;  %v990_v37 = vadd.f32 %v734_v35, %v478_v34  ;;  %v736_v40 = vld [vmem:[%s1834_s7 + $0x7c0] sm:$0xff]  ;;  %1244 = vst [vmem:[%s1849_s21 + $0x7a0] sm:$0xff] %v988_v32  ;;  %v991_v41 = vadd.f32 %v735_v38, %v479_v36  ;;  %v481_v43 = vld [vmem:[%s1827_s5 + $0x7c8] sm:$0xff] }
 0x116   : > { %1245 = vst [vmem:[%s1849_s21 + $0x7a8] sm:$0xff] %v989_v33  ;;  %v992_v42 = vadd.f32 %v736_v40, %v480_v39  ;;  %v737_v44 = vld [vmem:[%s1834_s7 + $0x7c8] sm:$0xff]  ;;  %v482_v45 = vld [vmem:[%s1827_s5 + $0x7d0] sm:$0xff]  ;;  %v483_v48 = vld [vmem:[%s1827_s5 + $0x7d8] sm:$0xff] }
 0x117   : > { %1246 = vst [vmem:[%s1849_s21 + $0x7b0] sm:$0xff] %v990_v37  ;;  %v993_v46 = vadd.f32 %v737_v44, %v481_v43  ;;  %v738_v47 = vld [vmem:[%s1834_s7 + $0x7d0] sm:$0xff]  ;;  %v739_v49 = vld [vmem:[%s1834_s7 + $0x7d8] sm:$0xff]  ;;  %1247 = vst [vmem:[%s1849_s21 + $0x7b8] sm:$0xff] %v991_v41 }
 0x118   : > { %1248 = vst [vmem:[%s1849_s21 + $0x7c0] sm:$0xff] %v992_v42  ;;  %v994_v50 = vadd.f32 %v738_v47, %v482_v45  ;;  %v995_v51 = vadd.f32 %v739_v49, %v483_v48  ;;  %v484_v52 = vld [vmem:[%s1827_s5 + $0x7e0] sm:$0xff]  ;;  %v485_v54 = vld [vmem:[%s1827_s5 + $0x7e8] sm:$0xff]  ;;  %v486_v57 = vld [vmem:[%s1827_s5 + $0x7f0] sm:$0xff] }
 0x119   : > { %v740_v53 = vld [vmem:[%s1834_s7 + $0x7e0] sm:$0xff]  ;;  %1249 = vst [vmem:[%s1849_s21 + $0x7c8] sm:$0xff] %v993_v46  ;;  %v741_v56 = vld [vmem:[%s1834_s7 + $0x7e8] sm:$0xff]  ;;  %v742_v58 = vld [vmem:[%s1834_s7 + $0x7f0] sm:$0xff] }
 0x11a   : > { %v996_v55 = vadd.f32 %v740_v53, %v484_v52  ;;  %1250 = vst [vmem:[%s1849_s21 + $0x7d0] sm:$0xff] %v994_v50  ;;  %1251 = vst [vmem:[%s1849_s21 + $0x7d8] sm:$0xff] %v995_v51  ;;  %v997_v59 = vadd.f32 %v741_v56, %v485_v54  ;;  %v998_v60 = vadd.f32 %v742_v58, %v486_v57  ;;  %v487_v61 = vld [vmem:[%s1827_s5 + $0x7f8] sm:$0xff] }
 0x11b   : > { %v743_v62 = vld [vmem:[%s1834_s7 + $0x7f8] sm:$0xff] }
 0x11c   : > { %1252 = vst [vmem:[%s1849_s21 + $0x7e0] sm:$0xff] %v996_v55  ;;  %v999_v63 = vadd.f32 %v743_v62, %v487_v61  ;;  %1253 = vst [vmem:[%s1849_s21 + $0x7e8] sm:$0xff] %v997_v59 }
 0x11d   : > { %1254 = vst [vmem:[%s1849_s21 + $0x7f0] sm:$0xff] %v998_v60 }
 0x11e   : > { %1255 = vst [vmem:[%s1849_s21 + $0x7f8] sm:$0xff] %v999_v63 }
 0x11f   : > { %1558 = shalt.err (!%p1555_p11)
}
 0x120   : > { %s1559_s20 = scalar_lea.hbm %s2611_s28, 32768  ;;  %s1563_s29 = scalar_lea.hbm %s2668_s2, 65536 }
 0x121   : > { %p1560_p1 = scmp.ne.s32.totalorder %s2611_s28, %s1559_s20  ;;  %p1564_p5 = scmp.lt.u32.totalorder %s2611_s28, %s2668_s2 }
 0x122   : > { %p1565_p4 = scmp.lt.u32.totalorder %s1563_s29, %s1559_s20  ;;  %p1567_p0 = scmp.lt.u32.totalorder %s1559_s20, %s2611_s28 }
 0x123   : > { %p1561_p6 = pnand %p1560_p1, %p2679_p3 }
 0x124   : > { %p1566_p8 = por %p1565_p4, %p1564_p5 }
 0x125   : > { %p1562_p2 = pneg %p1561_p6 }
 0x126   : > { %p1568_p12 = por %p1567_p0, %p1566_p8 }
 0x128   : > { %p1569_p13 = pnand %p1568_p12, %p1562_p2 }
 0x12a   : > { %1572 = shalt.err (!%p1569_p13)
}
 0x12b   : > { %s1638_s7 = smov 512   ;;  %s1639_s21 = smov 32  }
 0x12c   : > { %1418 = dma.vmem_to_hbm [thread:$0]  (%p2679_p3), %s2613_s18, 32768, %s2611_s28, %s1257_s30, %s1638_s7, %s1638_s7, %s1639_s21  }
 0x12d PF: > { %s1288_s8 = sand.u32 1, %s1611_s9   ;;  %p2680_p7 = scmp.ne.s32.totalorder %s2674_s24, 0 }
 0x12e   : > { %p2681_p10 = scmp.ge.s32.totalorder %s1631_s14, 2  ;;  %s1289_s12 = scalar_lea.sflag [#allocation4], %s1288_s8 }
 0x130   : > { %p1428_p9 = pnand %p2681_p10, %p2680_p7 }
 0x132   : > { %1606 = dma.done.wait (!%p1428_p9), %s1289_s12, 32768  }
 0x133   : > { %1608 = vsyncadd (!%p1428_p9), %s1289_s12, 4294934528  ;;  %s21_s14 = sadd.s32 1, %s1631_s14   ;;  %s2682_s9 = smov %s1615_s10 }
 0x134   : > { %p18_p11 = scmp.ge.s32.totalorder %s21_s14, 4   ;;  %s2683_s10 = smov %s1619_s11 }
 0x135   : > { %s2684_s11 = smov %s1711_s23  ;;  %s2685_s12 = smov %s1627_s13 }
 0x136   : > { %s2686_s13 = smov %s2688_s17  ;;  %20 = sbr.rel (!%p18_p11) target bundleno = 8 (0x8), region = 86 }
 0x13d   :  { %1294 = vsyncpa [#allocation3], 1 }
 0x13e   :  { %1296 = vsyncpa [#allocation3 + $0x1], 1 }
 0x13f   :  { %1297 = vsyncpa [#allocation6], 1 }
 0x140   :  { %1299 = vsyncpa [#allocation6 + $0x1], 1 }
 0x141   :  { %1300 = vsyncpa [#allocation4], 1 }
 0x142   :  { %1302 = vsyncpa [#allocation4 + $0x1], 1 }

</bundles_post_ra>
